<compile_context>
chip_gen: v7x
topology: tpu7x:2x2x1
jax: 0.10.0
libtpu: 0.0.40
codegen_flags: <defaults>
</compile_context>

<pallas_src>
import jax
import jax.numpy as jnp
import numpy as np
from jax.experimental import pallas as pl
from jax.experimental.pallas import tpu as pltpu


# ----------------------------- Pallas kernel -----------------------------
def _dbb_kernel(x_ref, wmid_ref, wtap_ref, bias_ref, out_ref, pad_ref):
    # x_ref:    (1, H*W, Cin)     one image, spatially flattened
    # wmid_ref: (Cin, C_all)      fused 1x1 weights (BN scales folded)
    # wtap_ref: (9, C_all, Cout)  per-tap stencil weights (all six branches folded)
    # bias_ref: (1, Cout)         total additive constant
    # out_ref:  (1, H*W, Cout)
    # pad_ref:  (H+2, W+2, C_all) zero-ring padded scratch
    Hp2, Wp2, C_all = pad_ref.shape
    H, W = Hp2 - 2, Wp2 - 2
    HW = H * W
    f32 = jnp.float32

    # 1) Fused pointwise stage: every branch's 1x1 conv (+ identity copy of x) in one matmul.
    x2 = x_ref[0]                                                    # (HW, Cin)
    mids = jnp.dot(x2, wmid_ref[...], preferred_element_type=f32)    # (HW, C_all)

    # 2) Shared padded buffer: zero only the 1-pixel border ring, then one interior store.
    pad_ref[0:1, :, :] = jnp.zeros((1, Wp2, C_all), f32)
    pad_ref[H + 1:H + 2, :, :] = jnp.zeros((1, Wp2, C_all), f32)
    pad_ref[:, 0:1, :] = jnp.zeros((Hp2, 1, C_all), f32)
    pad_ref[:, W + 1:W + 2, :] = jnp.zeros((Hp2, 1, C_all), f32)
    pad_ref[1:H + 1, 1:W + 1, :] = mids.reshape(H, W, C_all)

    # 3) One 3x3 stencil pass for all six branches: 9 accumulating MXU matmuls.
    #    Group by dx so only 3 unaligned column slices are materialized; the dy slices are
    #    aligned row-range slices of the flattened slab.
    acc = None
    for dx in range(3):
        cols = pad_ref[:, dx:dx + W, :].reshape(Hp2 * W, C_all)      # (  (H+2)*W, C_all)
        for dy in range(3):
            slab = cols[dy * W:dy * W + HW, :]                       # (HW, C_all)
            part = jnp.dot(slab, wtap_ref[dy * 3 + dx],
                           preferred_element_type=f32)               # (HW, Cout)
            acc = part if acc is None else acc + part

    # 4) Single precomputed additive constant.  nonlinear = nn.Identity().
    out_ref[0] = acc + bias_ref[...]


def diverse_branch_block(x_nhwc, p):
    N, H, W, Cin = x_nhwc.shape
    C_all = p['wmid'].shape[1]
    Cout = p['wtap'].shape[-1]
    x2 = x_nhwc.reshape(N, H * W, Cin)
    out = pl.pallas_call(
        _dbb_kernel,
        out_shape=jax.ShapeDtypeStruct((N, H * W, Cout), jnp.float32),
        grid=(N,),
        in_specs=[
            pl.BlockSpec((1, H * W, Cin), lambda n: (n, 0, 0)),
            pl.BlockSpec((Cin, C_all), lambda n: (0, 0)),
            pl.BlockSpec((9, C_all, Cout), lambda n: (0, 0, 0)),
            pl.BlockSpec((1, Cout), lambda n: (0, 0)),
        ],
        out_specs=pl.BlockSpec((1, H * W, Cout), lambda n: (n, 0, 0)),
        scratch_shapes=[pltpu.VMEM((H + 2, W + 2, C_all), jnp.float32)],
        compiler_params=pltpu.CompilerParams(dimension_semantics=("parallel",)),
    )(x2, p['wmid'], p['wtap'], p['bias'])
    return out.reshape(N, H, W, Cout)


# ----------------- deterministic parameter construction -----------------
def build_params(key, Cin, Cout, Cint):
    keys = iter(jax.random.split(key, 48))

    def nrm(shape, s=0.2):
        return (jax.random.normal(next(keys), shape) * s).astype(jnp.float32)

    def bn(C):
        # inference-mode BatchNorm folded to scale/shift
        gamma = jax.random.uniform(next(keys), (C,), minval=0.5, maxval=1.5)
        beta = jax.random.normal(next(keys), (C,)) * 0.1
        mean = jax.random.normal(next(keys), (C,)) * 0.1
        var = jax.random.uniform(next(keys), (C,), minval=0.5, maxval=1.5)
        scale = gamma / jnp.sqrt(var + 1e-5)
        shift = beta - mean * scale
        return scale.astype(jnp.float32), shift.astype(jnp.float32)

    raw = {}
    raw['w_o_hwio'] = nrm((3, 3, Cin, Cout))
    raw['bn_o'] = bn(Cout)
    raw['w_1_io'] = nrm((Cin, Cout))
    raw['bn_1'] = bn(Cout)
    raw['w_a_io'] = nrm((Cin, Cout))
    raw['bn_ap'] = bn(Cout)           # BNAndPadLayer inside dbb_avg
    raw['bn_ab'] = bn(Cout)           # avgbn
    raw['w_id_io'] = (jnp.eye(Cin, Cint, dtype=jnp.float32) + nrm((Cin, Cint), 0.05))
    raw['bn_k1'] = bn(Cint)
    raw['w_k2_hwio'] = nrm((3, 3, Cint, Cout))
    raw['bn_k2'] = bn(Cout)
    raw['k0x_io'] = nrm((Cin, Cout)); raw['b0x'] = nrm((Cout,), 0.1)
    raw['scale_x'] = nrm((Cout,), 0.1); raw['bias_x'] = nrm((Cout,), 0.1)
    raw['k0y_io'] = nrm((Cin, Cout)); raw['b0y'] = nrm((Cout,), 0.1)
    raw['scale_y'] = nrm((Cout,), 0.1); raw['bias_y'] = nrm((Cout,), 0.1)

    s2 = 2.0 ** 0.5
    mask_x = jnp.array([[1., 0., -1.], [s2, 0., -s2], [1., 0., -1.]], jnp.float32)
    mask_y = jnp.array([[1., s2, 1.], [0., 0., 0.], [-1., -s2, -1.]], jnp.float32)
    raw['dwx_hwc'] = mask_x[:, :, None] * raw['scale_x'][None, None, :]
    raw['dwy_hwc'] = mask_y[:, :, None] * raw['scale_y'][None, None, :]
    return raw


def to_kernel_params(raw, Cin, Cout, Cint):
    """Fold every BN / scale / pad-fill into (wmid, wtap, bias) on the host."""
    f = lambda a: np.asarray(a, np.float32)
    s_o, b_o = map(f, raw['bn_o'])
    s_1, b_1 = map(f, raw['bn_1'])
    s_ap, b_ap = map(f, raw['bn_ap'])
    s_ab, b_ab = map(f, raw['bn_ab'])
    s_k1, b_k1 = map(f, raw['bn_k1'])
    s_k2, b_k2 = map(f, raw['bn_k2'])
    w_o, w_1, w_a = f(raw['w_o_hwio']), f(raw['w_1_io']), f(raw['w_a_io'])
    w_id, w_k2 = f(raw['w_id_io']), f(raw['w_k2_hwio'])
    k0x, k0y = f(raw['k0x_io']), f(raw['k0y_io'])
    scale_x, bias_x = f(raw['scale_x']), f(raw['bias_x'])
    scale_y, bias_y = f(raw['scale_y']), f(raw['bias_y'])

    C_all = Cin + Cint + 3 * Cout
    # fused 1x1: padded-buffer channels = [ x | kxk mid | avg mid | sobelx mid | sobely mid ]
    wmid = np.concatenate([
        np.eye(Cin, dtype=np.float32),
        w_id * s_k1[None, :],
        w_a * (s_ap * s_ab / 9.0)[None, :],
        k0x * scale_x[None, :],
        k0y * scale_y[None, :],
    ], axis=1).astype(np.float32)

    s2 = 2.0 ** 0.5
    mask_x = np.array([[1., 0., -1.], [s2, 0., -s2], [1., 0., -1.]], np.float32)
    mask_y = np.array([[1., s2, 1.], [0., 0., 0.], [-1., -s2, -1.]], np.float32)
    eye_o = np.eye(Cout, dtype=np.float32)

    wtap = np.zeros((9, C_all, Cout), np.float32)
    for dy in range(3):
        for dx in range(3):
            t = dy * 3 + dx
            o = 0
            wtap[t, o:o + Cin, :] = w_o[dy, dx] * s_o[None, :];       o += Cin
            wtap[t, o:o + Cint, :] = w_k2[dy, dx] * s_k2[None, :];    o += Cint
            wtap[t, o:o + Cout, :] = eye_o;                           o += Cout     # avg (1/9,s_ab folded)
            wtap[t, o:o + Cout, :] = eye_o * mask_x[dy, dx];          o += Cout     # sobel-x
            wtap[t, o:o + Cout, :] = eye_o * mask_y[dy, dx]                          # sobel-y
    wtap[4, 0:Cin, :] += w_1 * s_1[None, :]     # dbb_1x1 rides the centre tap

    bias = (b_o + b_1
            + s_ab * b_ap + b_ab
            + s_k2 * np.einsum('yxic,i->c', w_k2, b_k1) + b_k2
            + bias_x + bias_y)                  # sobel b0 terms cancel (masks sum to 0)

    return {'wmid': jnp.asarray(wmid),
            'wtap': jnp.asarray(wtap),
            'bias': jnp.asarray(bias.reshape(1, Cout).astype(np.float32))}


# ----------------- pure-JAX reference (for correctness check) -----------------
def ref_forward(x, raw):
    N, H, W, Cin = x.shape
    Cout = raw['bn_o'][0].shape[0]
    Cint = raw['bn_k1'][0].shape[0]

    def conv(x_, w_hwio, padding, groups=1):
        return jax.lax.conv_general_dilated(
            x_, w_hwio, (1, 1), padding,
            dimension_numbers=('NHWC', 'HWIO', 'NHWC'),
            feature_group_count=groups)

    def bn(y, p):
        return y * p[0].reshape(1, 1, 1, -1) + p[1].reshape(1, 1, 1, -1)

    def pad_ring(y, fill):
        N_, H_, W_, C_ = y.shape
        out = jnp.pad(y, ((0, 0), (1, 1), (1, 1), (0, 0)))
        f = fill.reshape(1, 1, 1, -1)
        out = out.at[:, :1, :, :].set(jnp.broadcast_to(f, (N_, 1, W_ + 2, C_)))
        out = out.at[:, -1:, :, :].set(jnp.broadcast_to(f, (N_, 1, W_ + 2, C_)))
        out = out.at[:, :, :1, :].set(jnp.broadcast_to(f, (N_, H_ + 2, 1, C_)))
        out = out.at[:, :, -1:, :].set(jnp.broadcast_to(f, (N_, H_ + 2, 1, C_)))
        return out

    out = bn(conv(x, raw['w_o_hwio'], ((1, 1), (1, 1))), raw['bn_o'])
    out = out + bn(conv(x, raw['w_1_io'].reshape(1, 1, Cin, Cout), 'VALID'), raw['bn_1'])

    y = bn(conv(x, raw['w_a_io'].reshape(1, 1, Cin, Cout), 'VALID'), raw['bn_ap'])
    y = pad_ring(y, raw['bn_ap'][1])
    y = jax.lax.reduce_window(y, 0.0, jax.lax.add, (1, 3, 3, 1), (1, 1, 1, 1), 'VALID') / 9.0
    out = out + bn(y, raw['bn_ab'])

    y = bn(conv(x, raw['w_id_io'].reshape(1, 1, Cin, Cint), 'VALID'), raw['bn_k1'])
    y = pad_ring(y, raw['bn_k1'][1])
    y = conv(y, raw['w_k2_hwio'], 'VALID')
    out = out + bn(y, raw['bn_k2'])

    y = conv(x, raw['k0x_io'].reshape(1, 1, Cin, Cout), 'VALID') + raw['b0x'].reshape(1, 1, 1, -1)
    y = pad_ring(y, raw['b0x'])
    y = conv(y, raw['dwx_hwc'].reshape(3, 3, 1, Cout), 'VALID', groups=Cout)
    out = out + y + raw['bias_x'].reshape(1, 1, 1, -1)

    y = conv(x, raw['k0y_io'].reshape(1, 1, Cin, Cout), 'VALID') + raw['b0y'].reshape(1, 1, 1, -1)
    y = pad_ring(y, raw['b0y'])
    y = conv(y, raw['dwy_hwc'].reshape(3, 3, 1, Cout), 'VALID', groups=Cout)
    out = out + y + raw['bias_y'].reshape(1, 1, 1, -1)
    return out


if __name__ == "__main__":
    N, Cin, Cout, H, W = 2, 4, 4, 16, 16
    Cint = Cin  # internal_channels_1x1_3x3 = in_channels (since groups < out_channels)

    key = jax.random.PRNGKey(0)
    kx, kp = jax.random.split(key)
    x_nchw = jax.random.normal(kx, (N, Cin, H, W), jnp.float32)   # PyTorch NCHW input
    x = jnp.transpose(x_nchw, (0, 2, 3, 1))                       # NHWC for the kernel

    raw = build_params(kp, Cin, Cout, Cint)
    params = to_kernel_params(raw, Cin, Cout, Cint)

    out = diverse_branch_block(x, params)
    out = jax.block_until_ready(out)

    ref = ref_forward(x, raw)
    np.testing.assert_allclose(np.asarray(out), np.asarray(ref), rtol=2e-3, atol=2e-3)
    print("KERNEL_OK")
</pallas_src>

<mosaic_0001>
module attributes {stable_mosaic.version = 11 : i64} {
  func.func @_dbb_kernel(%arg0: i32, %arg1: memref<1x256x4xf32, #tpu.memory_space<vmem>>, %arg2: memref<4x20xf32, #tpu.memory_space<vmem>>, %arg3: memref<9x20x4xf32, #tpu.memory_space<vmem>>, %arg4: memref<1x4xf32, #tpu.memory_space<vmem>>, %arg5: memref<1x256x4xf32, #tpu.memory_space<vmem>>, %arg6: memref<18x18x20xf32, #tpu.memory_space<vmem>>) attributes {dimension_semantics = [#tpu.dimension_semantics<parallel>], iteration_bounds = array<i64: 2>, scalar_prefetch = 0 : i64, scratch_operands = 1 : i64, tpu.core_type = #tpu.core_type<tc>, window_params = [{transform_indices = @transform_0, window_bounds = array<i64: 1, 256, 4>}, {pipeline_mode = #tpu.pipeline_mode<synchronous>, transform_indices = @transform_1, window_bounds = array<i64: 4, 20>}, {pipeline_mode = #tpu.pipeline_mode<synchronous>, transform_indices = @transform_2, window_bounds = array<i64: 9, 20, 4>}, {pipeline_mode = #tpu.pipeline_mode<synchronous>, transform_indices = @transform_3, window_bounds = array<i64: 1, 4>}, {transform_indices = @transform_4, window_bounds = array<i64: 1, 256, 4>}]} {
    %c0 = arith.constant 0 : index
    %c0_0 = arith.constant 0 : index
    %c0_1 = arith.constant 0 : index
    %0 = vector.load %arg1[%c0, %c0_0, %c0_1] : memref<1x256x4xf32, #tpu.memory_space<vmem>>, vector<1x256x4xf32>
    %1 = vector.shape_cast %0 : vector<1x256x4xf32> to vector<256x4xf32>
    %c0_2 = arith.constant 0 : index
    %c0_3 = arith.constant 0 : index
    %2 = vector.load %arg2[%c0_2, %c0_3] : memref<4x20xf32, #tpu.memory_space<vmem>>, vector<4x20xf32>
    %cst = arith.constant dense<0.000000e+00> : vector<256x20xf32>
    %3 = tpu.matmul %1, %2, %cst {dimension_numbers = #tpu.dot_dimension_numbers<[1], [0], [0], [1], [0, 0, 1, 1], [], []>} : vector<256x4xf32>, vector<4x20xf32>, vector<256x20xf32> -> vector<256x20xf32>
    %cst_4 = arith.constant 0.000000e+00 : f32
    %4 = vector.broadcast %cst_4 : f32 to vector<1x18x20xf32>
    %c0_5 = arith.constant 0 : index
    %c0_6 = arith.constant 0 : index
    %c0_7 = arith.constant 0 : index
    %5 = vector.load %arg6[%c0_5, %c0_6, %c0_7] : memref<18x18x20xf32, #tpu.memory_space<vmem>>, vector<1x18x20xf32>
    tpu.vector_store %arg6[%c0_5, %c0_6, %c0_7], %4 {strides = array<i32>} : memref<18x18x20xf32, #tpu.memory_space<vmem>>, vector<1x18x20xf32>,
    %cst_8 = arith.constant 0.000000e+00 : f32
    %6 = vector.broadcast %cst_8 : f32 to vector<1x18x20xf32>
    %c17 = arith.constant 17 : index
    %c0_9 = arith.constant 0 : index
    %c0_10 = arith.constant 0 : index
    %7 = vector.load %arg6[%c17, %c0_9, %c0_10] : memref<18x18x20xf32, #tpu.memory_space<vmem>>, vector<1x18x20xf32>
    tpu.vector_store %arg6[%c17, %c0_9, %c0_10], %6 {strides = array<i32>} : memref<18x18x20xf32, #tpu.memory_space<vmem>>, vector<1x18x20xf32>,
    %cst_11 = arith.constant 0.000000e+00 : f32
    %8 = vector.broadcast %cst_11 : f32 to vector<18x1x20xf32>
    %c0_12 = arith.constant 0 : index
    %c0_13 = arith.constant 0 : index
    %c0_14 = arith.constant 0 : index
    %9 = vector.load %arg6[%c0_12, %c0_13, %c0_14] : memref<18x18x20xf32, #tpu.memory_space<vmem>>, vector<18x1x20xf32>
    tpu.vector_store %arg6[%c0_12, %c0_13, %c0_14], %8 {strides = array<i32>} : memref<18x18x20xf32, #tpu.memory_space<vmem>>, vector<18x1x20xf32>,
    %cst_15 = arith.constant 0.000000e+00 : f32
    %10 = vector.broadcast %cst_15 : f32 to vector<18x1x20xf32>
    %c0_16 = arith.constant 0 : index
    %c17_17 = arith.constant 17 : index
    %c0_18 = arith.constant 0 : index
    %11 = vector.load %arg6[%c0_16, %c17_17, %c0_18] : memref<18x18x20xf32, #tpu.memory_space<vmem>>, vector<18x1x20xf32>
    tpu.vector_store %arg6[%c0_16, %c17_17, %c0_18], %10 {strides = array<i32>} : memref<18x18x20xf32, #tpu.memory_space<vmem>>, vector<18x1x20xf32>,
    %12 = vector.shape_cast %3 : vector<256x20xf32> to vector<16x16x20xf32>
    %c1 = arith.constant 1 : index
    %c1_19 = arith.constant 1 : index
    %c0_20 = arith.constant 0 : index
    %13 = vector.load %arg6[%c1, %c1_19, %c0_20] : memref<18x18x20xf32, #tpu.memory_space<vmem>>, vector<16x16x20xf32>
    tpu.vector_store %arg6[%c1, %c1_19, %c0_20], %12 {strides = array<i32>} : memref<18x18x20xf32, #tpu.memory_space<vmem>>, vector<16x16x20xf32>,
    %c0_21 = arith.constant 0 : index
    %c0_22 = arith.constant 0 : index
    %c0_23 = arith.constant 0 : index
    %14 = vector.load %arg6[%c0_21, %c0_22, %c0_23] : memref<18x18x20xf32, #tpu.memory_space<vmem>>, vector<18x16x20xf32>
    %15 = vector.shape_cast %14 : vector<18x16x20xf32> to vector<288x20xf32>
    %16 = vector.extract_strided_slice %15 {offsets = [0, 0], sizes = [256, 20], strides = [1, 1]} : vector<288x20xf32> to vector<256x20xf32>
    %c0_24 = arith.constant 0 : index
    %c0_25 = arith.constant 0 : index
    %c0_26 = arith.constant 0 : index
    %17 = vector.load %arg3[%c0_24, %c0_25, %c0_26] : memref<9x20x4xf32, #tpu.memory_space<vmem>>, vector<1x20x4xf32>
    %18 = vector.shape_cast %17 : vector<1x20x4xf32> to vector<20x4xf32>
    %cst_27 = arith.constant dense<0.000000e+00> : vector<256x4xf32>
    %19 = tpu.matmul %16, %18, %cst_27 {dimension_numbers = #tpu.dot_dimension_numbers<[1], [0], [0], [1], [0, 0, 1, 1], [], []>} : vector<256x20xf32>, vector<20x4xf32>, vector<256x4xf32> -> vector<256x4xf32>
    %20 = vector.extract_strided_slice %15 {offsets = [16, 0], sizes = [256, 20], strides = [1, 1]} : vector<288x20xf32> to vector<256x20xf32>
    %c3 = arith.constant 3 : index
    %c0_28 = arith.constant 0 : index
    %c0_29 = arith.constant 0 : index
    %21 = vector.load %arg3[%c3, %c0_28, %c0_29] : memref<9x20x4xf32, #tpu.memory_space<vmem>>, vector<1x20x4xf32>
    %22 = vector.shape_cast %21 : vector<1x20x4xf32> to vector<20x4xf32>
    %cst_30 = arith.constant dense<0.000000e+00> : vector<256x4xf32>
    %23 = tpu.matmul %20, %22, %cst_30 {dimension_numbers = #tpu.dot_dimension_numbers<[1], [0], [0], [1], [0, 0, 1, 1], [], []>} : vector<256x20xf32>, vector<20x4xf32>, vector<256x4xf32> -> vector<256x4xf32>
    %24 = arith.addf %19, %23 : vector<256x4xf32>
    %25 = vector.extract_strided_slice %15 {offsets = [32, 0], sizes = [256, 20], strides = [1, 1]} : vector<288x20xf32> to vector<256x20xf32>
    %c6 = arith.constant 6 : index
    %c0_31 = arith.constant 0 : index
    %c0_32 = arith.constant 0 : index
    %26 = vector.load %arg3[%c6, %c0_31, %c0_32] : memref<9x20x4xf32, #tpu.memory_space<vmem>>, vector<1x20x4xf32>
    %27 = vector.shape_cast %26 : vector<1x20x4xf32> to vector<20x4xf32>
    %cst_33 = arith.constant dense<0.000000e+00> : vector<256x4xf32>
    %28 = tpu.matmul %25, %27, %cst_33 {dimension_numbers = #tpu.dot_dimension_numbers<[1], [0], [0], [1], [0, 0, 1, 1], [], []>} : vector<256x20xf32>, vector<20x4xf32>, vector<256x4xf32> -> vector<256x4xf32>
    %29 = arith.addf %24, %28 : vector<256x4xf32>
    %c0_34 = arith.constant 0 : index
    %c1_35 = arith.constant 1 : index
    %c0_36 = arith.constant 0 : index
    %30 = vector.load %arg6[%c0_34, %c1_35, %c0_36] : memref<18x18x20xf32, #tpu.memory_space<vmem>>, vector<18x16x20xf32>
    %31 = vector.shape_cast %30 : vector<18x16x20xf32> to vector<288x20xf32>
    %32 = vector.extract_strided_slice %31 {offsets = [0, 0], sizes = [256, 20], strides = [1, 1]} : vector<288x20xf32> to vector<256x20xf32>
    %c1_37 = arith.constant 1 : index
    %c0_38 = arith.constant 0 : index
    %c0_39 = arith.constant 0 : index
    %33 = vector.load %arg3[%c1_37, %c0_38, %c0_39] : memref<9x20x4xf32, #tpu.memory_space<vmem>>, vector<1x20x4xf32>
    %34 = vector.shape_cast %33 : vector<1x20x4xf32> to vector<20x4xf32>
    %cst_40 = arith.constant dense<0.000000e+00> : vector<256x4xf32>
    %35 = tpu.matmul %32, %34, %cst_40 {dimension_numbers = #tpu.dot_dimension_numbers<[1], [0], [0], [1], [0, 0, 1, 1], [], []>} : vector<256x20xf32>, vector<20x4xf32>, vector<256x4xf32> -> vector<256x4xf32>
    %36 = arith.addf %29, %35 : vector<256x4xf32>
    %37 = vector.extract_strided_slice %31 {offsets = [16, 0], sizes = [256, 20], strides = [1, 1]} : vector<288x20xf32> to vector<256x20xf32>
    %c4 = arith.constant 4 : index
    %c0_41 = arith.constant 0 : index
    %c0_42 = arith.constant 0 : index
    %38 = vector.load %arg3[%c4, %c0_41, %c0_42] : memref<9x20x4xf32, #tpu.memory_space<vmem>>, vector<1x20x4xf32>
    %39 = vector.shape_cast %38 : vector<1x20x4xf32> to vector<20x4xf32>
    %cst_43 = arith.constant dense<0.000000e+00> : vector<256x4xf32>
    %40 = tpu.matmul %37, %39, %cst_43 {dimension_numbers = #tpu.dot_dimension_numbers<[1], [0], [0], [1], [0, 0, 1, 1], [], []>} : vector<256x20xf32>, vector<20x4xf32>, vector<256x4xf32> -> vector<256x4xf32>
    %41 = arith.addf %36, %40 : vector<256x4xf32>
    %42 = vector.extract_strided_slice %31 {offsets = [32, 0], sizes = [256, 20], strides = [1, 1]} : vector<288x20xf32> to vector<256x20xf32>
    %c7 = arith.constant 7 : index
    %c0_44 = arith.constant 0 : index
    %c0_45 = arith.constant 0 : index
    %43 = vector.load %arg3[%c7, %c0_44, %c0_45] : memref<9x20x4xf32, #tpu.memory_space<vmem>>, vector<1x20x4xf32>
    %44 = vector.shape_cast %43 : vector<1x20x4xf32> to vector<20x4xf32>
    %cst_46 = arith.constant dense<0.000000e+00> : vector<256x4xf32>
    %45 = tpu.matmul %42, %44, %cst_46 {dimension_numbers = #tpu.dot_dimension_numbers<[1], [0], [0], [1], [0, 0, 1, 1], [], []>} : vector<256x20xf32>, vector<20x4xf32>, vector<256x4xf32> -> vector<256x4xf32>
    %46 = arith.addf %41, %45 : vector<256x4xf32>
    %c0_47 = arith.constant 0 : index
    %c2 = arith.constant 2 : index
    %c0_48 = arith.constant 0 : index
    %47 = vector.load %arg6[%c0_47, %c2, %c0_48] : memref<18x18x20xf32, #tpu.memory_space<vmem>>, vector<18x16x20xf32>
    %48 = vector.shape_cast %47 : vector<18x16x20xf32> to vector<288x20xf32>
    %49 = vector.extract_strided_slice %48 {offsets = [0, 0], sizes = [256, 20], strides = [1, 1]} : vector<288x20xf32> to vector<256x20xf32>
    %c2_49 = arith.constant 2 : index
    %c0_50 = arith.constant 0 : index
    %c0_51 = arith.constant 0 : index
    %50 = vector.load %arg3[%c2_49, %c0_50, %c0_51] : memref<9x20x4xf32, #tpu.memory_space<vmem>>, vector<1x20x4xf32>
    %51 = vector.shape_cast %50 : vector<1x20x4xf32> to vector<20x4xf32>
    %cst_52 = arith.constant dense<0.000000e+00> : vector<256x4xf32>
    %52 = tpu.matmul %49, %51, %cst_52 {dimension_numbers = #tpu.dot_dimension_numbers<[1], [0], [0], [1], [0, 0, 1, 1], [], []>} : vector<256x20xf32>, vector<20x4xf32>, vector<256x4xf32> -> vector<256x4xf32>
    %53 = arith.addf %46, %52 : vector<256x4xf32>
    %54 = vector.extract_strided_slice %48 {offsets = [16, 0], sizes = [256, 20], strides = [1, 1]} : vector<288x20xf32> to vector<256x20xf32>
    %c5 = arith.constant 5 : index
    %c0_53 = arith.constant 0 : index
    %c0_54 = arith.constant 0 : index
    %55 = vector.load %arg3[%c5, %c0_53, %c0_54] : memref<9x20x4xf32, #tpu.memory_space<vmem>>, vector<1x20x4xf32>
    %56 = vector.shape_cast %55 : vector<1x20x4xf32> to vector<20x4xf32>
    %cst_55 = arith.constant dense<0.000000e+00> : vector<256x4xf32>
    %57 = tpu.matmul %54, %56, %cst_55 {dimension_numbers = #tpu.dot_dimension_numbers<[1], [0], [0], [1], [0, 0, 1, 1], [], []>} : vector<256x20xf32>, vector<20x4xf32>, vector<256x4xf32> -> vector<256x4xf32>
    %58 = arith.addf %53, %57 : vector<256x4xf32>
    %59 = vector.extract_strided_slice %48 {offsets = [32, 0], sizes = [256, 20], strides = [1, 1]} : vector<288x20xf32> to vector<256x20xf32>
    %c8 = arith.constant 8 : index
    %c0_56 = arith.constant 0 : index
    %c0_57 = arith.constant 0 : index
    %60 = vector.load %arg3[%c8, %c0_56, %c0_57] : memref<9x20x4xf32, #tpu.memory_space<vmem>>, vector<1x20x4xf32>
    %61 = vector.shape_cast %60 : vector<1x20x4xf32> to vector<20x4xf32>
    %cst_58 = arith.constant dense<0.000000e+00> : vector<256x4xf32>
    %62 = tpu.matmul %59, %61, %cst_58 {dimension_numbers = #tpu.dot_dimension_numbers<[1], [0], [0], [1], [0, 0, 1, 1], [], []>} : vector<256x20xf32>, vector<20x4xf32>, vector<256x4xf32> -> vector<256x4xf32>
    %63 = arith.addf %58, %62 : vector<256x4xf32>
    %c0_59 = arith.constant 0 : index
    %c0_60 = arith.constant 0 : index
    %64 = vector.load %arg4[%c0_59, %c0_60] : memref<1x4xf32, #tpu.memory_space<vmem>>, vector<1x4xf32>
    %65 = vector.broadcast %64 : vector<1x4xf32> to vector<256x4xf32>
    %66 = arith.addf %63, %65 : vector<256x4xf32>
    %c0_61 = arith.constant 0 : index
    %c0_62 = arith.constant 0 : index
    %c0_63 = arith.constant 0 : index
    %67 = vector.load %arg5[%c0_61, %c0_62, %c0_63] : memref<1x256x4xf32, #tpu.memory_space<vmem>>, vector<1x256x4xf32>
    %68 = vector.shape_cast %67 : vector<1x256x4xf32> to vector<256x4xf32>
    %69 = vector.shape_cast %66 : vector<256x4xf32> to vector<1x256x4xf32>
    tpu.vector_store %arg5[%c0_61, %c0_62, %c0_63], %69 {strides = array<i32>} : memref<1x256x4xf32, #tpu.memory_space<vmem>>, vector<1x256x4xf32>,
    return
  }
  func.func @transform_0(%arg0: i32) -> (i32, i32, i32) {
    %c0_i32 = arith.constant 0 : i32
    %c0_i32_0 = arith.constant 0 : i32
    %c0_i32_1 = arith.constant 0 : i32
    return %arg0, %c0_i32, %c0_i32_0 : i32, i32, i32
  }
  func.func @transform_1(%arg0: i32) -> (i32, i32) {
    %c0_i32 = arith.constant 0 : i32
    %c0_i32_0 = arith.constant 0 : i32
    %c0_i32_1 = arith.constant 0 : i32
    return %c0_i32, %c0_i32_0 : i32, i32
  }
  func.func @transform_2(%arg0: i32) -> (i32, i32, i32) {
    %c0_i32 = arith.constant 0 : i32
    %c0_i32_0 = arith.constant 0 : i32
    %c0_i32_1 = arith.constant 0 : i32
    %c0_i32_2 = arith.constant 0 : i32
    return %c0_i32, %c0_i32_0, %c0_i32_1 : i32, i32, i32
  }
  func.func @transform_3(%arg0: i32) -> (i32, i32) {
    %c0_i32 = arith.constant 0 : i32
    %c0_i32_0 = arith.constant 0 : i32
    %c0_i32_1 = arith.constant 0 : i32
    return %c0_i32, %c0_i32_0 : i32, i32
  }
  func.func @transform_4(%arg0: i32) -> (i32, i32, i32) {
    %c0_i32 = arith.constant 0 : i32
    %c0_i32_0 = arith.constant 0 : i32
    %c0_i32_1 = arith.constant 0 : i32
    return %arg0, %c0_i32, %c0_i32_0 : i32, i32, i32
  }
}

</mosaic_0001>

<bundles_post_ra>
// kernel: tpu_custom_call.1
= control target key start
LH: loop header
LB: loop body
LE: loop exit
PB: predicated region body
PF: predicated region fallthrough
CT: control target
= control target key end

     0   :  { %s5092_s15 = smov 0   ;;  %s6337_s0 = inlined_call_operand.vmem [shape: f32[2,256,4], index: 0, kind: input, shape index: {}]   ;;  %s6338_s1 = inlined_call_operand.vmem [shape: f32[4,20], index: 1, kind: input, shape index: {}]   ;;  %s6339_s2 = inlined_call_operand.vmem [shape: f32[9,20,4], index: 2, kind: input, shape index: {}]   ;;  %s6340_s3 = inlined_call_operand.vmem [shape: f32[1,4], index: 3, kind: input, shape index: {}]   ;;  %s6341_s4 = inlined_call_operand.vmem [shape: f32[2,256,4], index: 4, kind: output, shape index: {}]  }
   0x1 LB: > { %s3505_s16 = sadd.s32 4294967295, %s5064_s15   ;;  %p3509_p0 = scmp.ge.s32.totalorder %s5064_s15, 1  ;;  %s5064_s15 = sphi %s5092_s15, %s14_s15  }
   0x2   : > { %p162_p1 = scmp.lt.s32.totalorder %s5064_s15, 3 }
   0x4   : > { %p163_p2 = pnand %p3509_p0, %p162_p1 }
   0x6   : > { %166 = sbr.rel (%p163_p2) target bundleno = 777 (0x309), region = 36 }
   0xd   : > { %v230_v0 = vld [vmem:[%s6338_s1] sm:$0xf]  ;;  %vm328_vm0 = vcmask 1043456   ;;  %p188_p3 = scmp.lt.s32.totalorder %s3505_s16, 1  ;;  %vm231_vm1 = vcmask 31744   ;;  %vm557_vm2 = vcmask 162816  }
   0xe   : > { %4221 = vmatprep.subr.msk.mxu0 %vm328_vm0, %v230_v0  ;;  %vm566_vm3 = vcmask 155648   ;;  %v5066_v33 = vmov 0.0   ;;  %v3688_v34 = vld [vmem:[%s6339_s2 + $0x60] sm:$0xff]  ;;  %v3689_v35 = vld [vmem:[%s6339_s2 + $0x68] sm:$0xff]  ;;  %v3548_v38 = vld [vmem:[%s6339_s2 + $0x50] sm:$0xff]  ;;  %vm560_vm4 = vcmask 156672  }
   0xf   : > { %4222 = vmatpush3.msk.msra.mxu0 %vm328_vm0, %v230_v0  ;;  %s6366_s16 = smov (!%p188_p3, %s3505_s16), 1  ;;  %568 = vst.msk [vmem:[#allocation2 + $0x18] sm:$0x1] %vm566_vm3, %v5066_v33  ;;  %569 = vst.msk [vmem:[#allocation2 + $0x30] sm:$0x1] %vm566_vm3, %v5066_v33  ;;  %v3547_v36 = vld [vmem:[%s6339_s2 + $0x48] sm:$0xff]  ;;  %v4773_v37 = vpack.c.bf16 %v3689_v35, %v3688_v34 }
  0x10   : > { %s3871_s19 = sshll.u32 %s6366_s16, 8  ;;  %558 = vst.msk [vmem:[#allocation2] sm:$0xff] %vm557_vm2, %v5066_v33  ;;  %559 = vst.msk [vmem:[#allocation2 + $0x8] sm:$0xff] %vm557_vm2, %v5066_v33  ;;  %v4757_v39 = vpack.c.bf16 %v3548_v38, %v3547_v36  ;;  %v3690_v40 = vld [vmem:[%s6339_s2 + $0x70] sm:$0xf]  ;;  %v3724_v42 = vld [vmem:[%s6339_s2 + $0xa8] sm:$0xff] }
  0x11   : > { %s5113_s22 = scalar_lea.vmem %s6337_s0, %s3871_s19  ;;  %563 = vst.msk [vmem:[#allocation2 + $0x198] sm:$0xff] %vm557_vm2, %v5066_v33  ;;  %564 = vst.msk [vmem:[#allocation2 + $0x1a0] sm:$0xff] %vm557_vm2, %v5066_v33  ;;  %4774 = vmatprep.subr.bf16.mxu1 %v4773_v37  ;;  %v3549_v41 = vld [vmem:[%s6339_s2 + $0x58] sm:$0xf]  ;;  %v3725_v43 = vld [vmem:[%s6339_s2 + $0xb0] sm:$0xff]  ;;  %s6214_s9 = scalar_lea.vmem %s6341_s4, %s3871_s19 }
  0x12   : > { %v198_v1 = vld [vmem:[%s5113_s22] sm:$0xff]  ;;  %v199_v2 = vld [vmem:[%s5113_s22 + $0x8] sm:$0xff]  ;;  %v200_v3 = vld [vmem:[%s5113_s22 + $0x10] sm:$0xff]  ;;  %570 = vst.msk [vmem:[#allocation2 + $0x48] sm:$0x1] %vm566_vm3, %v5066_v33  ;;  %4758 = vmatprep.subr.bf16.mxu0 %v4757_v39  ;;  %4776 = vmatpush3.bf16.msra.mxu1 %v4773_v37  ;;  %v4777_v44 = vpack.c.bf16 %v3725_v43, %v3724_v42 }
  0x13   : > { %4223 = vmatprep.mubr.msk.f32.mxu0 %vm231_vm1, %v198_v1  ;;  %v201_v4 = vld [vmem:[%s5113_s22 + $0x18] sm:$0xff]  ;;  %v202_v5 = vld [vmem:[%s5113_s22 + $0x20] sm:$0xff]  ;;  %v203_v6 = vld [vmem:[%s5113_s22 + $0x28] sm:$0xff]  ;;  %571 = vst.msk [vmem:[#allocation2 + $0x60] sm:$0x1] %vm566_vm3, %v5066_v33  ;;  %4491 = vmatprep.subr.msk.mxu1 %vm328_vm0, %v3690_v40 }
  0x14   : > { %4224 = vmatmul.mubr.msk.f32.vlgmr.msra.gmra.mrb[0].mxu0 %vm231_vm1, %v199_v2  ;;  %v204_v7 = vld [vmem:[%s5113_s22 + $0x30] sm:$0xff]  ;;  %v205_v8 = vld [vmem:[%s5113_s22 + $0x38] sm:$0xff]  ;;  %v206_v9 = vld [vmem:[%s5113_s22 + $0x40] sm:$0xff]  ;;  %572 = vst.msk [vmem:[#allocation2 + $0x78] sm:$0x1] %vm566_vm3, %v5066_v33 }
  0x15   : > { %4226 = vmatprep.mubr.msk.f32.mxu0 %vm231_vm1, %v200_v3  ;;  %v207_v10 = vld [vmem:[%s5113_s22 + $0x48] sm:$0xff]  ;;  %v208_v11 = vld [vmem:[%s5113_s22 + $0x50] sm:$0xff]  ;;  %v209_v12 = vld [vmem:[%s5113_s22 + $0x58] sm:$0xff]  ;;  %573 = vst.msk [vmem:[#allocation2 + $0x90] sm:$0x1] %vm566_vm3, %v5066_v33  ;;  %4760 = vmatpush3.bf16.msra.mxu0 %v4757_v39 }
  0x16   : > { %v210_v13 = vld [vmem:[%s5113_s22 + $0x60] sm:$0xff]  ;;  %v211_v14 = vld [vmem:[%s5113_s22 + $0x68] sm:$0xff]  ;;  %v212_v15 = vld [vmem:[%s5113_s22 + $0x70] sm:$0xff]  ;;  %574 = vst.msk [vmem:[#allocation2 + $0xa8] sm:$0x1] %vm566_vm3, %v5066_v33  ;;  %4275 = vmatprep.subr.msk.mxu0 %vm328_vm0, %v3549_v41  ;;  %4492 = vmatpush3.msk.msra.mxu1 %vm328_vm0, %v3690_v40 }
  0x17   : > { %v213_v16 = vld [vmem:[%s5113_s22 + $0x78] sm:$0xff]  ;;  %v214_v17 = vld [vmem:[%s5113_s22 + $0x80] sm:$0xff]  ;;  %v215_v18 = vld [vmem:[%s5113_s22 + $0x88] sm:$0xff]  ;;  %575 = vst.msk [vmem:[#allocation2 + $0xc0] sm:$0x1] %vm566_vm3, %v5066_v33  ;;  %4778 = vmatprep.subr.bf16.mxu1 %v4777_v44 }
  0x18   : > { %4227 = vmatmul.mubr.msk.f32.gmra.mrb[2].mxu0 %vm231_vm1, %v201_v4  ;;  %v216_v19 = vld [vmem:[%s5113_s22 + $0x90] sm:$0xff]  ;;  %v217_v20 = vld [vmem:[%s5113_s22 + $0x98] sm:$0xff]  ;;  %v218_v21 = vld [vmem:[%s5113_s22 + $0xa0] sm:$0xff]  ;;  %576 = vst.msk [vmem:[#allocation2 + $0xd8] sm:$0x1] %vm566_vm3, %v5066_v33 }
  0x19   : > { %4229 = vmatprep.mubr.msk.f32.mxu0 %vm231_vm1, %v202_v5  ;;  %v219_v22 = vld [vmem:[%s5113_s22 + $0xa8] sm:$0xff]  ;;  %v220_v23 = vld [vmem:[%s5113_s22 + $0xb0] sm:$0xff]  ;;  %v221_v24 = vld [vmem:[%s5113_s22 + $0xb8] sm:$0xff]  ;;  %577 = vst.msk [vmem:[#allocation2 + $0xf0] sm:$0x1] %vm566_vm3, %v5066_v33  ;;  %4276 = vmatpush3.msk.msra.mxu0 %vm328_vm0, %v3549_v41 }
  0x1a   : > { %v222_v25 = vld [vmem:[%s5113_s22 + $0xc0] sm:$0xff]  ;;  %v223_v26 = vld [vmem:[%s5113_s22 + $0xc8] sm:$0xff]  ;;  %v224_v27 = vld [vmem:[%s5113_s22 + $0xd0] sm:$0xff]  ;;  %578 = vst.msk [vmem:[#allocation2 + $0x108] sm:$0x1] %vm566_vm3, %v5066_v33 }
  0x1b   : > { %v225_v28 = vld [vmem:[%s5113_s22 + $0xd8] sm:$0xff]  ;;  %v226_v29 = vld [vmem:[%s5113_s22 + $0xe0] sm:$0xff]  ;;  %v227_v30 = vld [vmem:[%s5113_s22 + $0xe8] sm:$0xff]  ;;  %579 = vst.msk [vmem:[#allocation2 + $0x120] sm:$0x1] %vm566_vm3, %v5066_v33 }
  0x1c   : > { %4230 = vmatmul.mubr.msk.f32.gmra.mrb[4].mxu0 %vm231_vm1, %v203_v6  ;;  %v228_v31 = vld [vmem:[%s5113_s22 + $0xf0] sm:$0xff]  ;;  %v229_v32 = vld [vmem:[%s5113_s22 + $0xf8] sm:$0xff]  ;;  %580 = vst.msk [vmem:[#allocation2 + $0x138] sm:$0x1] %vm566_vm3, %v5066_v33  ;;  %581 = vst.msk [vmem:[#allocation2 + $0x150] sm:$0x1] %vm566_vm3, %v5066_v33 }
  0x1d   : > { %4232 = vmatprep.mubr.msk.f32.mxu0 %vm231_vm1, %v204_v7  ;;  %582 = vst.msk [vmem:[#allocation2 + $0x168] sm:$0x1] %vm566_vm3, %v5066_v33  ;;  %583 = vst.msk [vmem:[#allocation2 + $0x180] sm:$0x1] %vm566_vm3, %v5066_v33  ;;  %v672_v45 = vld [vmem:[%s6339_s2] sm:$0xff]  ;;  %v673_v46 = vld [vmem:[%s6339_s2 + $0x8] sm:$0xff] }
  0x1e   : > { %586 = vst.msk [vmem:[#allocation2 + $0x29] sm:$0x1] %vm566_vm3, %v5066_v33  ;;  %587 = vst.msk [vmem:[#allocation2 + $0x41] sm:$0x1] %vm566_vm3, %v5066_v33  ;;  %v4761_v47 = vpack.c.bf16 %v673_v46, %v672_v45  ;;  %v3726_v53 = vld [vmem:[%s6339_s2 + $0xb8] sm:$0xf] }
  0x1f   : > { %588 = vst.msk [vmem:[#allocation2 + $0x59] sm:$0x1] %vm566_vm3, %v5066_v33  ;;  %589 = vst.msk [vmem:[#allocation2 + $0x71] sm:$0x1] %vm566_vm3, %v5066_v33  ;;  %v674_v54 = vld [vmem:[%s6339_s2 + $0x10] sm:$0xf] }
  0x20   : > { %4233 = vmatmul.mubr.msk.f32.gmra.mrb[6].mxu0 %vm231_vm1, %v205_v8  ;;  %590 = vst.msk [vmem:[#allocation2 + $0x89] sm:$0x1] %vm566_vm3, %v5066_v33  ;;  %591 = vst.msk [vmem:[#allocation2 + $0xa1] sm:$0x1] %vm566_vm3, %v5066_v33  ;;  %4762 = vmatprep.subr.bf16.mxu0 %v4761_v47  ;;  %v3760_v55 = vld [vmem:[%s6339_s2 + $0x30] sm:$0xff]  ;;  %v3761_v56 = vld [vmem:[%s6339_s2 + $0x38] sm:$0xff] }
  0x21   : > { %4235 = vmatprep.mubr.msk.f32.mxu0 %vm231_vm1, %v206_v9  ;;  %592 = vst.msk [vmem:[#allocation2 + $0xb9] sm:$0x1] %vm566_vm3, %v5066_v33  ;;  %593 = vst.msk [vmem:[#allocation2 + $0xd1] sm:$0x1] %vm566_vm3, %v5066_v33  ;;  %v3616_v62 = vld [vmem:[%s6339_s2 + $0x90] sm:$0xff]  ;;  %v3617_v63 = vld [vmem:[%s6339_s2 + $0x98] sm:$0xff]  ;;  %v5344_v5 = vpack.c.bf16 %v3761_v56, %v3760_v55 }
  0x22   : > { %594 = vst.msk [vmem:[#allocation2 + $0xe9] sm:$0x1] %vm566_vm3, %v5066_v33  ;;  %595 = vst.msk [vmem:[#allocation2 + $0x101] sm:$0x1] %vm566_vm3, %v5066_v33  ;;  %v5346_v6 = vpack.c.bf16 %v3617_v63, %v3616_v62 }
  0x23   : > { %596 = vst.msk [vmem:[#allocation2 + $0x119] sm:$0x1] %vm566_vm3, %v5066_v33  ;;  %597 = vst.msk [vmem:[#allocation2 + $0x131] sm:$0x1] %vm566_vm3, %v5066_v33 }
  0x24   : > { %4236 = vmatmul.mubr.msk.f32.gmra.mrb[8].mxu0 %vm231_vm1, %v207_v10  ;;  %598 = vst.msk [vmem:[#allocation2 + $0x149] sm:$0x1] %vm566_vm3, %v5066_v33  ;;  %599 = vst.msk [vmem:[#allocation2 + $0x161] sm:$0x1] %vm566_vm3, %v5066_v33 }
  0x25   : > { %4238 = vmatprep.mubr.msk.f32.mxu0 %vm231_vm1, %v208_v11  ;;  %600 = vst.msk [vmem:[#allocation2 + $0x179] sm:$0x1] %vm566_vm3, %v5066_v33  ;;  %601 = vst.msk [vmem:[#allocation2 + $0x191] sm:$0x1] %vm566_vm3, %v5066_v33 }
  0x26   : > { %567 = vst.msk [vmem:[#allocation2] sm:$0x1] %vm566_vm3, %v5066_v33  ;;  %584 = vst.msk [vmem:[#allocation2 + $0x198] sm:$0x1] %vm566_vm3, %v5066_v33 }
  0x27   : > { %561 = vst.msk [vmem:[#allocation2 + $0x10] sm:$0x3] %vm560_vm4, %v5066_v33  ;;  %565 = vst.msk [vmem:[#allocation2 + $0x1a8] sm:$0x3] %vm560_vm4, %v5066_v33 }
  0x28   : > { %4239 = vmatmul.mubr.msk.f32.gmra.mrb[10].mxu0 %vm231_vm1, %v209_v12  ;;  %585 = vst.msk [vmem:[#allocation2 + $0x11] sm:$0x1] %vm566_vm3, %v5066_v33  ;;  %602 = vst.msk [vmem:[#allocation2 + $0x1a9] sm:$0x1] %vm566_vm3, %v5066_v33 }
  0x29   : > { %4241 = vmatprep.mubr.msk.f32.mxu0 %vm231_vm1, %v210_v13 }
  0x2c   : > { %4242 = vmatmul.mubr.msk.f32.gmra.mrb[12].mxu0 %vm231_vm1, %v211_v14 }
  0x2d   : > { %4244 = vmatprep.mubr.msk.f32.mxu0 %vm231_vm1, %v212_v15 }
  0x30   : > { %4245 = vmatmul.mubr.msk.f32.gmra.mrb[14].mxu0 %vm231_vm1, %v213_v16 }
  0x31   : > { %4247 = vmatprep.mubr.msk.f32.mxu0 %vm231_vm1, %v214_v17 }
  0x34   : > { %4248 = vmatmul.mubr.msk.f32.gmra.mrb[16].mxu0 %vm231_vm1, %v215_v18 }
  0x35   : > { %4250 = vmatprep.mubr.msk.f32.mxu0 %vm231_vm1, %v216_v19 }
  0x38   : > { %4251 = vmatmul.mubr.msk.f32.gmra.mrb[18].mxu0 %vm231_vm1, %v217_v20 }
  0x39   : > { %4253 = vmatprep.mubr.msk.f32.mxu0 %vm231_vm1, %v218_v21 }
  0x3c   : > { %4254 = vmatmul.mubr.msk.f32.gmra.mrb[20].mxu0 %vm231_vm1, %v219_v22 }
  0x3d   : > { %4256 = vmatprep.mubr.msk.f32.mxu0 %vm231_vm1, %v220_v23 }
  0x40   : > { %4257 = vmatmul.mubr.msk.f32.gmra.mrb[22].mxu0 %vm231_vm1, %v221_v24 }
  0x41   : > { %4259 = vmatprep.mubr.msk.f32.mxu0 %vm231_vm1, %v222_v25 }
  0x44   : > { %4260 = vmatmul.mubr.msk.f32.gmra.mrb[24].mxu0 %vm231_vm1, %v223_v26 }
  0x45   : > { %4262 = vmatprep.mubr.msk.f32.mxu0 %vm231_vm1, %v224_v27 }
  0x48   : > { %4263 = vmatmul.mubr.msk.f32.gmra.mrb[26].mxu0 %vm231_vm1, %v225_v28 }
  0x49   : > { %4265 = vmatprep.mubr.msk.f32.mxu0 %vm231_vm1, %v226_v29 }
  0x4c   : > { %4266 = vmatmul.mubr.msk.f32.gmra.mrb[28].mxu0 %vm231_vm1, %v227_v30 }
  0x4d   : > { %4268 = vmatprep.mubr.msk.f32.mxu0 %vm231_vm1, %v228_v31 }
  0x50   : > { %4269 = vmatmul.mubr.msk.f32.gmra.mrb[30].mxu0 %vm231_vm1, %v229_v32 }
  0xe7   : > { %v4225_v48 = vpop.f32.mrb[0].mxu0 }
  0xe8   : > { %605 = vst.msk [vmem:[#allocation2 + $0x21] sm:$0xff] %vm557_vm2, %v4225_v48  ;;  %v398_v49 = vpop.f32.mrb[1].mxu0 }
  0xe9   : > { %604 = vst.msk [vmem:[#allocation2 + $0x19] sm:$0xff] %vm557_vm2, %v398_v49 }
  0xeb   : > { %v4228_v50 = vpop.f32.mrb[2].mxu0 }
  0xec   : > { %607 = vst.msk [vmem:[#allocation2 + $0x39] sm:$0xff] %vm557_vm2, %v4228_v50  ;;  %v408_v51 = vpop.f32.mrb[3].mxu0 }
  0xed   : > { %606 = vst.msk [vmem:[#allocation2 + $0x31] sm:$0xff] %vm557_vm2, %v408_v51 }
  0xef   : > { %v4231_v52 = vpop.f32.mrb[4].mxu0  ;;  %v5323_v61 = vld [vmem:[#allocation2 + $0x21] sm:$0xff] }
  0xf0   : > { %609 = vst.msk [vmem:[#allocation2 + $0x51] sm:$0xff] %vm557_vm2, %v4231_v52  ;;  %v418_v57 = vpop.f32.mrb[5].mxu0  ;;  %v5312_v58 = vld [vmem:[#allocation2 + $0x18] sm:$0xff]  ;;  %v5316_v60 = vld [vmem:[#allocation2 + $0x20] sm:$0xff]  ;;  %6352 = vst [vmem:[#allocation4_spill] sm:$0xff] %v5323_v61 }
  0xf1   : > { %v5314_v59 = vld [vmem:[#allocation2 + $0x19] sm:$0xff]  ;;  %608 = vst.msk [vmem:[#allocation2 + $0x49] sm:$0xff] %vm557_vm2, %v418_v57  ;;  %4277 = vmatprep.mubr.msk.f32.mxu0 %vm557_vm2, %v5312_v58 }
  0xf2   : > { %6351 = vst [vmem:[#allocation3_spill] sm:$0xff] %v5314_v59  ;;  %4493 = vmatprep.mubr.msk.f32.mxu1 %vm557_vm2, %v5314_v59  ;;  %4278 = vmatmul.mubr.msk.f32.vlgmr.msra.gmra.mrb[32].mxu0 %vm557_vm2, %v5316_v60 }
  0xf3   : > { %4494 = vmatmul.mubr.msk.f32.vlgmr.msra.gmra.mrb[0].mxu1 %vm557_vm2, %v5323_v61  ;;  %v4234_v0 = vpop.f32.mrb[6].mxu0  ;;  %4764 = vmatpush3.bf16.msra.mxu0 %v4761_v47  ;;  %v5353_v7 = vld [vmem:[#allocation2 + $0x39] sm:$0xff] }
  0xf4   : > { %4780 = vmatpush3.bf16.msra.mxu1 %v4777_v44  ;;  %611 = vst.msk [vmem:[#allocation2 + $0x69] sm:$0xff] %vm557_vm2, %v4234_v0  ;;  %v428_v1 = vpop.f32.mrb[7].mxu0  ;;  %v5336_v2 = vld [vmem:[#allocation2 + $0x30] sm:$0xff]  ;;  %v5340_v4 = vld [vmem:[#allocation2 + $0x38] sm:$0xff]  ;;  %4329 = vmatprep.subr.msk.mxu0 %vm328_vm0, %v674_v54 }
  0xf5   : > { %v5338_v3 = vld [vmem:[#allocation2 + $0x31] sm:$0xff]  ;;  %4545 = vmatprep.subr.msk.mxu1 %vm328_vm0, %v3726_v53  ;;  %610 = vst.msk [vmem:[#allocation2 + $0x61] sm:$0xff] %vm557_vm2, %v428_v1  ;;  %4280 = vmatprep.mubr.msk.f32.mxu0 %vm557_vm2, %v5336_v2 }
  0xf6   : > { %6353 = vst [vmem:[#allocation5_spill] sm:$0xff] %v5338_v3  ;;  %4496 = vmatprep.mubr.msk.f32.mxu1 %vm557_vm2, %v5338_v3  ;;  %4281 = vmatmul.mubr.msk.f32.gmra.mrb[34].mxu0 %vm557_vm2, %v5340_v4 }
  0xf7   : > { %4497 = vmatmul.mubr.msk.f32.gmra.mrb[2].mxu1 %vm557_vm2, %v5353_v7  ;;  %v4237_v8 = vpop.f32.mrb[8].mxu0  ;;  %4330 = vmatpush3.msk.msra.mxu0 %vm328_vm0, %v674_v54  ;;  %v5375_v13 = vld [vmem:[#allocation2 + $0x51] sm:$0xff] }
  0xf8   : > { %4546 = vmatpush3.msk.msra.mxu1 %vm328_vm0, %v3726_v53  ;;  %613 = vst.msk [vmem:[#allocation2 + $0x81] sm:$0xff] %vm557_vm2, %v4237_v8  ;;  %v438_v9 = vpop.f32.mrb[9].mxu0  ;;  %v5362_v10 = vld [vmem:[#allocation2 + $0x48] sm:$0xff]  ;;  %v5366_v12 = vld [vmem:[#allocation2 + $0x50] sm:$0xff]  ;;  %4766 = vmatprep.subr.bf16.mxu0 %v5346_v6 }
  0xf9   : > { %v5364_v11 = vld [vmem:[#allocation2 + $0x49] sm:$0xff]  ;;  %4782 = vmatprep.subr.bf16.mxu1 %v5344_v5  ;;  %612 = vst.msk [vmem:[#allocation2 + $0x79] sm:$0xff] %vm557_vm2, %v438_v9  ;;  %4283 = vmatprep.mubr.msk.f32.mxu0 %vm557_vm2, %v5362_v10 }
  0xfa   : > { %4499 = vmatprep.mubr.msk.f32.mxu1 %vm557_vm2, %v5364_v11  ;;  %4284 = vmatmul.mubr.msk.f32.gmra.mrb[36].mxu0 %vm557_vm2, %v5366_v12 }
  0xfb   : > { %4500 = vmatmul.mubr.msk.f32.gmra.mrb[4].mxu1 %vm557_vm2, %v5375_v13  ;;  %v4240_v14 = vpop.f32.mrb[10].mxu0  ;;  %v5393_v19 = vld [vmem:[#allocation2 + $0x69] sm:$0xff] }
  0xfc   : > { %615 = vst.msk [vmem:[#allocation2 + $0x99] sm:$0xff] %vm557_vm2, %v4240_v14  ;;  %v448_v15 = vpop.f32.mrb[11].mxu0  ;;  %v5382_v16 = vld [vmem:[#allocation2 + $0x60] sm:$0xff]  ;;  %v5386_v18 = vld [vmem:[#allocation2 + $0x68] sm:$0xff] }
  0xfd   : > { %v5384_v17 = vld [vmem:[#allocation2 + $0x61] sm:$0xff]  ;;  %614 = vst.msk [vmem:[#allocation2 + $0x91] sm:$0xff] %vm557_vm2, %v448_v15  ;;  %4286 = vmatprep.mubr.msk.f32.mxu0 %vm557_vm2, %v5382_v16 }
  0xfe   : > { %4502 = vmatprep.mubr.msk.f32.mxu1 %vm557_vm2, %v5384_v17  ;;  %4287 = vmatmul.mubr.msk.f32.gmra.mrb[38].mxu0 %vm557_vm2, %v5386_v18 }
  0xff   : > { %4503 = vmatmul.mubr.msk.f32.gmra.mrb[6].mxu1 %vm557_vm2, %v5393_v19  ;;  %v4243_v20 = vpop.f32.mrb[12].mxu0  ;;  %v5411_v25 = vld [vmem:[#allocation2 + $0x81] sm:$0xff] }
 0x100   : > { %617 = vst.msk [vmem:[#allocation2 + $0xb1] sm:$0xff] %vm557_vm2, %v4243_v20  ;;  %v458_v21 = vpop.f32.mrb[13].mxu0  ;;  %v5400_v22 = vld [vmem:[#allocation2 + $0x78] sm:$0xff]  ;;  %v5404_v24 = vld [vmem:[#allocation2 + $0x80] sm:$0xff] }
 0x101   : > { %v5402_v23 = vld [vmem:[#allocation2 + $0x79] sm:$0xff]  ;;  %616 = vst.msk [vmem:[#allocation2 + $0xa9] sm:$0xff] %vm557_vm2, %v458_v21  ;;  %4289 = vmatprep.mubr.msk.f32.mxu0 %vm557_vm2, %v5400_v22 }
 0x102   : > { %4505 = vmatprep.mubr.msk.f32.mxu1 %vm557_vm2, %v5402_v23  ;;  %4290 = vmatmul.mubr.msk.f32.gmra.mrb[40].mxu0 %vm557_vm2, %v5404_v24 }
 0x103   : > { %4506 = vmatmul.mubr.msk.f32.gmra.mrb[8].mxu1 %vm557_vm2, %v5411_v25  ;;  %v4246_v26 = vpop.f32.mrb[14].mxu0  ;;  %v5429_v31 = vld [vmem:[#allocation2 + $0x99] sm:$0xff] }
 0x104   : > { %619 = vst.msk [vmem:[#allocation2 + $0xc9] sm:$0xff] %vm557_vm2, %v4246_v26  ;;  %v468_v27 = vpop.f32.mrb[15].mxu0  ;;  %v5418_v28 = vld [vmem:[#allocation2 + $0x90] sm:$0xff]  ;;  %v5422_v30 = vld [vmem:[#allocation2 + $0x98] sm:$0xff] }
 0x105   : > { %v5420_v29 = vld [vmem:[#allocation2 + $0x91] sm:$0xff]  ;;  %618 = vst.msk [vmem:[#allocation2 + $0xc1] sm:$0xff] %vm557_vm2, %v468_v27  ;;  %4292 = vmatprep.mubr.msk.f32.mxu0 %vm557_vm2, %v5418_v28 }
 0x106   : > { %4508 = vmatprep.mubr.msk.f32.mxu1 %vm557_vm2, %v5420_v29  ;;  %4293 = vmatmul.mubr.msk.f32.gmra.mrb[42].mxu0 %vm557_vm2, %v5422_v30 }
 0x107   : > { %4509 = vmatmul.mubr.msk.f32.gmra.mrb[10].mxu1 %vm557_vm2, %v5429_v31  ;;  %v4249_v32 = vpop.f32.mrb[16].mxu0  ;;  %v5447_v37 = vld [vmem:[#allocation2 + $0xb1] sm:$0xff] }
 0x108   : > { %621 = vst.msk [vmem:[#allocation2 + $0xe1] sm:$0xff] %vm557_vm2, %v4249_v32  ;;  %v478_v33 = vpop.f32.mrb[17].mxu0  ;;  %v5436_v34 = vld [vmem:[#allocation2 + $0xa8] sm:$0xff]  ;;  %v5440_v36 = vld [vmem:[#allocation2 + $0xb0] sm:$0xff] }
 0x109   : > { %v5438_v35 = vld [vmem:[#allocation2 + $0xa9] sm:$0xff]  ;;  %620 = vst.msk [vmem:[#allocation2 + $0xd9] sm:$0xff] %vm557_vm2, %v478_v33  ;;  %4295 = vmatprep.mubr.msk.f32.mxu0 %vm557_vm2, %v5436_v34 }
 0x10a   : > { %4511 = vmatprep.mubr.msk.f32.mxu1 %vm557_vm2, %v5438_v35  ;;  %4296 = vmatmul.mubr.msk.f32.gmra.mrb[44].mxu0 %vm557_vm2, %v5440_v36 }
 0x10b   : > { %4512 = vmatmul.mubr.msk.f32.gmra.mrb[12].mxu1 %vm557_vm2, %v5447_v37  ;;  %v4252_v38 = vpop.f32.mrb[18].mxu0  ;;  %v5465_v43 = vld [vmem:[#allocation2 + $0xc9] sm:$0xff] }
 0x10c   : > { %623 = vst.msk [vmem:[#allocation2 + $0xf9] sm:$0xff] %vm557_vm2, %v4252_v38  ;;  %v488_v39 = vpop.f32.mrb[19].mxu0  ;;  %v5454_v40 = vld [vmem:[#allocation2 + $0xc0] sm:$0xff]  ;;  %v5458_v42 = vld [vmem:[#allocation2 + $0xc8] sm:$0xff] }
 0x10d   : > { %v5456_v41 = vld [vmem:[#allocation2 + $0xc1] sm:$0xff]  ;;  %622 = vst.msk [vmem:[#allocation2 + $0xf1] sm:$0xff] %vm557_vm2, %v488_v39  ;;  %4298 = vmatprep.mubr.msk.f32.mxu0 %vm557_vm2, %v5454_v40 }
 0x10e   : > { %4514 = vmatprep.mubr.msk.f32.mxu1 %vm557_vm2, %v5456_v41  ;;  %4299 = vmatmul.mubr.msk.f32.gmra.mrb[46].mxu0 %vm557_vm2, %v5458_v42 }
 0x10f   : > { %4515 = vmatmul.mubr.msk.f32.gmra.mrb[14].mxu1 %vm557_vm2, %v5465_v43  ;;  %v4255_v44 = vpop.f32.mrb[20].mxu0  ;;  %v5483_v49 = vld [vmem:[#allocation2 + $0xe1] sm:$0xff] }
 0x110   : > { %625 = vst.msk [vmem:[#allocation2 + $0x111] sm:$0xff] %vm557_vm2, %v4255_v44  ;;  %v498_v45 = vpop.f32.mrb[21].mxu0  ;;  %v5472_v46 = vld [vmem:[#allocation2 + $0xd8] sm:$0xff]  ;;  %v5476_v48 = vld [vmem:[#allocation2 + $0xe0] sm:$0xff] }
 0x111   : > { %v5474_v47 = vld [vmem:[#allocation2 + $0xd9] sm:$0xff]  ;;  %624 = vst.msk [vmem:[#allocation2 + $0x109] sm:$0xff] %vm557_vm2, %v498_v45  ;;  %4301 = vmatprep.mubr.msk.f32.mxu0 %vm557_vm2, %v5472_v46 }
 0x112   : > { %4517 = vmatprep.mubr.msk.f32.mxu1 %vm557_vm2, %v5474_v47  ;;  %4302 = vmatmul.mubr.msk.f32.gmra.mrb[48].mxu0 %vm557_vm2, %v5476_v48 }
 0x113   : > { %4518 = vmatmul.mubr.msk.f32.gmra.mrb[16].mxu1 %vm557_vm2, %v5483_v49  ;;  %v4258_v50 = vpop.f32.mrb[22].mxu0  ;;  %v5501_v55 = vld [vmem:[#allocation2 + $0xf9] sm:$0xff] }
 0x114   : > { %627 = vst.msk [vmem:[#allocation2 + $0x129] sm:$0xff] %vm557_vm2, %v4258_v50  ;;  %v508_v51 = vpop.f32.mrb[23].mxu0  ;;  %v5490_v52 = vld [vmem:[#allocation2 + $0xf0] sm:$0xff]  ;;  %v5494_v54 = vld [vmem:[#allocation2 + $0xf8] sm:$0xff] }
 0x115   : > { %v5492_v53 = vld [vmem:[#allocation2 + $0xf1] sm:$0xff]  ;;  %626 = vst.msk [vmem:[#allocation2 + $0x121] sm:$0xff] %vm557_vm2, %v508_v51  ;;  %4304 = vmatprep.mubr.msk.f32.mxu0 %vm557_vm2, %v5490_v52 }
 0x116   : > { %4520 = vmatprep.mubr.msk.f32.mxu1 %vm557_vm2, %v5492_v53  ;;  %4305 = vmatmul.mubr.msk.f32.gmra.mrb[50].mxu0 %vm557_vm2, %v5494_v54 }
 0x117   : > { %4521 = vmatmul.mubr.msk.f32.gmra.mrb[18].mxu1 %vm557_vm2, %v5501_v55  ;;  %v4261_v56 = vpop.f32.mrb[24].mxu0  ;;  %v5519_v1 = vld [vmem:[#allocation2 + $0x111] sm:$0xff] }
 0x118   : > { %629 = vst.msk [vmem:[#allocation2 + $0x141] sm:$0xff] %vm557_vm2, %v4261_v56  ;;  %v518_v57 = vpop.f32.mrb[25].mxu0  ;;  %v5508_v62 = vld [vmem:[#allocation2 + $0x108] sm:$0xff]  ;;  %v5512_v0 = vld [vmem:[#allocation2 + $0x110] sm:$0xff] }
 0x119   : > { %v5510_v63 = vld [vmem:[#allocation2 + $0x109] sm:$0xff]  ;;  %628 = vst.msk [vmem:[#allocation2 + $0x139] sm:$0xff] %vm557_vm2, %v518_v57  ;;  %4307 = vmatprep.mubr.msk.f32.mxu0 %vm557_vm2, %v5508_v62 }
 0x11a   : > { %4523 = vmatprep.mubr.msk.f32.mxu1 %vm557_vm2, %v5510_v63  ;;  %4308 = vmatmul.mubr.msk.f32.gmra.mrb[52].mxu0 %vm557_vm2, %v5512_v0 }
 0x11b   : > { %4524 = vmatmul.mubr.msk.f32.gmra.mrb[20].mxu1 %vm557_vm2, %v5519_v1  ;;  %v4264_v8 = vpop.f32.mrb[26].mxu0  ;;  %v5537_v21 = vld [vmem:[#allocation2 + $0x129] sm:$0xff] }
 0x11c   : > { %631 = vst.msk [vmem:[#allocation2 + $0x159] sm:$0xff] %vm557_vm2, %v4264_v8  ;;  %v528_v9 = vpop.f32.mrb[27].mxu0  ;;  %v5526_v14 = vld [vmem:[#allocation2 + $0x120] sm:$0xff]  ;;  %v5530_v20 = vld [vmem:[#allocation2 + $0x128] sm:$0xff] }
 0x11d   : > { %v5528_v15 = vld [vmem:[#allocation2 + $0x121] sm:$0xff]  ;;  %630 = vst.msk [vmem:[#allocation2 + $0x151] sm:$0xff] %vm557_vm2, %v528_v9  ;;  %4310 = vmatprep.mubr.msk.f32.mxu0 %vm557_vm2, %v5526_v14 }
 0x11e   : > { %4526 = vmatprep.mubr.msk.f32.mxu1 %vm557_vm2, %v5528_v15  ;;  %4311 = vmatmul.mubr.msk.f32.gmra.mrb[54].mxu0 %vm557_vm2, %v5530_v20 }
 0x11f   : > { %4527 = vmatmul.mubr.msk.f32.gmra.mrb[22].mxu1 %vm557_vm2, %v5537_v21  ;;  %v4267_v26 = vpop.f32.mrb[28].mxu0  ;;  %v5555_v39 = vld [vmem:[#allocation2 + $0x141] sm:$0xff] }
 0x120   : > { %633 = vst.msk [vmem:[#allocation2 + $0x171] sm:$0xff] %vm557_vm2, %v4267_v26  ;;  %v538_v27 = vpop.f32.mrb[29].mxu0  ;;  %v5544_v32 = vld [vmem:[#allocation2 + $0x138] sm:$0xff]  ;;  %v5548_v38 = vld [vmem:[#allocation2 + $0x140] sm:$0xff] }
 0x121   : > { %v5546_v33 = vld [vmem:[#allocation2 + $0x139] sm:$0xff]  ;;  %632 = vst.msk [vmem:[#allocation2 + $0x169] sm:$0xff] %vm557_vm2, %v538_v27  ;;  %4313 = vmatprep.mubr.msk.f32.mxu0 %vm557_vm2, %v5544_v32 }
 0x122   : > { %4529 = vmatprep.mubr.msk.f32.mxu1 %vm557_vm2, %v5546_v33  ;;  %4314 = vmatmul.mubr.msk.f32.gmra.mrb[56].mxu0 %vm557_vm2, %v5548_v38 }
 0x123   : > { %4530 = vmatmul.mubr.msk.f32.gmra.mrb[24].mxu1 %vm557_vm2, %v5555_v39  ;;  %v4270_v44 = vpop.f32.mrb[30].mxu0  ;;  %v5573_v57 = vld [vmem:[#allocation2 + $0x159] sm:$0xff] }
 0x124   : > { %635 = vst.msk [vmem:[#allocation2 + $0x189] sm:$0xff] %vm557_vm2, %v4270_v44  ;;  %v548_v45 = vpop.f32.mrb[31].mxu0  ;;  %v5562_v50 = vld [vmem:[#allocation2 + $0x150] sm:$0xff]  ;;  %v5566_v56 = vld [vmem:[#allocation2 + $0x158] sm:$0xff]  ;;  %v636_v44 = vld [vmem:[#allocation2] sm:$0xff] }
 0x125   : > { %v5564_v51 = vld [vmem:[#allocation2 + $0x151] sm:$0xff]  ;;  %634 = vst.msk [vmem:[#allocation2 + $0x181] sm:$0xff] %vm557_vm2, %v548_v45  ;;  %4316 = vmatprep.mubr.msk.f32.mxu0 %vm557_vm2, %v5562_v50 }
 0x126   : > { %4532 = vmatprep.mubr.msk.f32.mxu1 %vm557_vm2, %v5564_v51  ;;  %4317 = vmatmul.mubr.msk.f32.gmra.mrb[58].mxu0 %vm557_vm2, %v5566_v56 }
 0x127   : > { %4533 = vmatmul.mubr.msk.f32.gmra.mrb[26].mxu1 %vm557_vm2, %v5573_v57  ;;  %v5589_v27 = vld [vmem:[#allocation2 + $0x171] sm:$0xff] }
 0x128   : > { %v5579_v8 = vld [vmem:[#allocation2 + $0x168] sm:$0xff]  ;;  %v5583_v26 = vld [vmem:[#allocation2 + $0x170] sm:$0xff] }
 0x129   : > { %6354 = vst [vmem:[#allocation6_spill] sm:$0xff] %v5579_v8  ;;  %v5581_v9 = vld [vmem:[#allocation2 + $0x169] sm:$0xff]  ;;  %6355 = vst [vmem:[#allocation7_spill] sm:$0xff] %v5583_v26  ;;  %4319 = vmatprep.mubr.msk.f32.mxu0 %vm557_vm2, %v5579_v8 }
 0x12a   : > { %4535 = vmatprep.mubr.msk.f32.mxu1 %vm557_vm2, %v5581_v9  ;;  %4320 = vmatmul.mubr.msk.f32.gmra.mrb[60].mxu0 %vm557_vm2, %v5583_v26  ;;  %v637_v26 = vld [vmem:[#allocation2 + $0x8] sm:$0xff] }
 0x12b   : > { %4536 = vmatmul.mubr.msk.f32.gmra.mrb[28].mxu1 %vm557_vm2, %v5589_v27  ;;  %v5605_v8 = vld [vmem:[#allocation2 + $0x189] sm:$0xff] }
 0x12c   : > { %v5595_v45 = vld [vmem:[#allocation2 + $0x180] sm:$0xff]  ;;  %v5599_v59 = vld [vmem:[#allocation2 + $0x188] sm:$0xff] }
 0x12d   : > { %6356 = vst [vmem:[#allocation8_spill] sm:$0xff] %v5595_v45  ;;  %v5597_v61 = vld [vmem:[#allocation2 + $0x181] sm:$0xff]  ;;  %6357 = vst [vmem:[#allocation9_spill] sm:$0xff] %v5599_v59  ;;  %4322 = vmatprep.mubr.msk.f32.mxu0 %vm557_vm2, %v5595_v45 }
 0x12e   : > { %4538 = vmatprep.mubr.msk.f32.mxu1 %vm557_vm2, %v5597_v61  ;;  %4323 = vmatmul.mubr.msk.f32.gmra.mrb[62].mxu0 %vm557_vm2, %v5599_v59  ;;  %v3762_v45 = vld [vmem:[%s6339_s2 + $0x40] sm:$0xf]  ;;  %v3796_v59 = vld [vmem:[%s6339_s2 + $0x78] sm:$0xff] }
 0x12f   : > { %4539 = vmatmul.mubr.msk.f32.gmra.mrb[30].mxu1 %vm557_vm2, %v5605_v8  ;;  %4331 = vmatprep.mubr.msk.f32.mxu0 %vm557_vm2, %v636_v44 }
 0x130   : > { %4547 = vmatprep.mubr.msk.f32.mxu1 %vm557_vm2, %v5338_v3  ;;  %v3797_v3 = vld [vmem:[%s6339_s2 + $0x80] sm:$0xff] }
 0x131   : > { %v5636_v44 = vpack.c.bf16 %v3797_v3, %v3796_v59  ;;  %v6358_v3 = vld [vmem:[#allocation6_spill] sm:$0xff] }
 0x132   : > { %4332 = vmatmul.mubr.msk.f32.vlgmr.msra.gmra.mrb[32].mxu0 %vm557_vm2, %v637_v26  ;;  %v3618_v26 = vld [vmem:[%s6339_s2 + $0xa0] sm:$0xf] }
 0x133   : > { %4548 = vmatmul.mubr.msk.f32.vlgmr.msra.gmra.mrb[0].mxu1 %vm557_vm2, %v5353_v7  ;;  %4334 = vmatprep.mubr.msk.f32.mxu0 %vm557_vm2, %v5312_v58  ;;  %v3653_v58 = vld [vmem:[%s6339_s2 + $0x20] sm:$0xff] }
 0x134   : > { %4784 = vmatpush3.bf16.msra.mxu1 %v5344_v5  ;;  %4550 = vmatprep.mubr.msk.f32.mxu1 %vm557_vm2, %v5364_v11  ;;  %v3652_v5 = vld [vmem:[%s6339_s2 + $0x18] sm:$0xff] }
 0x135   : > { %4599 = vmatprep.subr.msk.mxu1 %vm328_vm0, %v3762_v45  ;;  %4768 = vmatpush3.bf16.msra.mxu0 %v5346_v6  ;;  %v5654_v59 = vpack.c.bf16 %v3653_v58, %v3652_v5  ;;  %v1542_v6 = vld [vmem:[#allocation2 + $0x1a1] sm:$0xff] }
 0x136   : > { %4335 = vmatmul.mubr.msk.f32.gmra.mrb[34].mxu0 %vm557_vm2, %v5316_v60  ;;  %4383 = vmatprep.subr.msk.mxu0 %vm328_vm0, %v3618_v26  ;;  %v1541_v60 = vld [vmem:[#allocation2 + $0x199] sm:$0xff] }
 0x137   : > { %4551 = vmatmul.mubr.msk.f32.gmra.mrb[2].mxu1 %vm557_vm2, %v5375_v13  ;;  %4337 = vmatprep.mubr.msk.f32.mxu0 %vm557_vm2, %v5336_v2  ;;  %v3832_v5 = vld [vmem:[%s6339_s2 + $0xc0] sm:$0xff] }
 0x138   : > { %4553 = vmatprep.mubr.msk.f32.mxu1 %vm557_vm2, %v5384_v17  ;;  %4600 = vmatpush3.msk.msra.mxu1 %vm328_vm0, %v3762_v45  ;;  %v2443_v45 = vld [vmem:[#allocation2 + $0x2] sm:$0xff]  ;;  %v5783_v58 = vld [vmem:[#allocation2 + $0x1a] sm:$0xff] }
 0x139   : > { %4384 = vmatpush3.msk.msra.mxu0 %vm328_vm0, %v3618_v26  ;;  %4786 = vmatprep.subr.bf16.mxu1 %v5636_v44  ;;  %v6359_v26 = vld [vmem:[#allocation7_spill] sm:$0xff] }
 0x13a   : > { %4338 = vmatmul.mubr.msk.f32.gmra.mrb[36].mxu0 %vm557_vm2, %v5340_v4  ;;  %4770 = vmatprep.subr.bf16.mxu0 %v5654_v59 }
 0x13b   : > { %4554 = vmatmul.mubr.msk.f32.gmra.mrb[4].mxu1 %vm557_vm2, %v5393_v19  ;;  %4340 = vmatprep.mubr.msk.f32.mxu0 %vm557_vm2, %v5362_v10 }
 0x13c   : > { %4556 = vmatprep.mubr.msk.f32.mxu1 %vm557_vm2, %v5402_v23 }
 0x13e   : > { %4341 = vmatmul.mubr.msk.f32.gmra.mrb[38].mxu0 %vm557_vm2, %v5366_v12 }
 0x13f   : > { %4557 = vmatmul.mubr.msk.f32.gmra.mrb[6].mxu1 %vm557_vm2, %v5411_v25  ;;  %4343 = vmatprep.mubr.msk.f32.mxu0 %vm557_vm2, %v5382_v16 }
 0x140   : > { %4559 = vmatprep.mubr.msk.f32.mxu1 %vm557_vm2, %v5420_v29 }
 0x142   : > { %4344 = vmatmul.mubr.msk.f32.gmra.mrb[40].mxu0 %vm557_vm2, %v5386_v18 }
 0x143   : > { %4560 = vmatmul.mubr.msk.f32.gmra.mrb[8].mxu1 %vm557_vm2, %v5429_v31  ;;  %4346 = vmatprep.mubr.msk.f32.mxu0 %vm557_vm2, %v5400_v22 }
 0x144   : > { %4562 = vmatprep.mubr.msk.f32.mxu1 %vm557_vm2, %v5438_v35 }
 0x146   : > { %4347 = vmatmul.mubr.msk.f32.gmra.mrb[42].mxu0 %vm557_vm2, %v5404_v24 }
 0x147   : > { %4563 = vmatmul.mubr.msk.f32.gmra.mrb[10].mxu1 %vm557_vm2, %v5447_v37  ;;  %4349 = vmatprep.mubr.msk.f32.mxu0 %vm557_vm2, %v5418_v28 }
 0x148   : > { %4565 = vmatprep.mubr.msk.f32.mxu1 %vm557_vm2, %v5456_v41 }
 0x14a   : > { %4350 = vmatmul.mubr.msk.f32.gmra.mrb[44].mxu0 %vm557_vm2, %v5422_v30 }
 0x14b   : > { %4566 = vmatmul.mubr.msk.f32.gmra.mrb[12].mxu1 %vm557_vm2, %v5465_v43  ;;  %4352 = vmatprep.mubr.msk.f32.mxu0 %vm557_vm2, %v5436_v34 }
 0x14c   : > { %4568 = vmatprep.mubr.msk.f32.mxu1 %vm557_vm2, %v5474_v47 }
 0x14e   : > { %4353 = vmatmul.mubr.msk.f32.gmra.mrb[46].mxu0 %vm557_vm2, %v5440_v36 }
 0x14f   : > { %4569 = vmatmul.mubr.msk.f32.gmra.mrb[14].mxu1 %vm557_vm2, %v5483_v49  ;;  %4355 = vmatprep.mubr.msk.f32.mxu0 %vm557_vm2, %v5454_v40 }
 0x150   : > { %4571 = vmatprep.mubr.msk.f32.mxu1 %vm557_vm2, %v5492_v53 }
 0x152   : > { %4356 = vmatmul.mubr.msk.f32.gmra.mrb[48].mxu0 %vm557_vm2, %v5458_v42 }
 0x153   : > { %4572 = vmatmul.mubr.msk.f32.gmra.mrb[16].mxu1 %vm557_vm2, %v5501_v55  ;;  %4358 = vmatprep.mubr.msk.f32.mxu0 %vm557_vm2, %v5472_v46 }
 0x154   : > { %4574 = vmatprep.mubr.msk.f32.mxu1 %vm557_vm2, %v5510_v63 }
 0x156   : > { %4359 = vmatmul.mubr.msk.f32.gmra.mrb[50].mxu0 %vm557_vm2, %v5476_v48 }
 0x157   : > { %4575 = vmatmul.mubr.msk.f32.gmra.mrb[18].mxu1 %vm557_vm2, %v5519_v1  ;;  %4361 = vmatprep.mubr.msk.f32.mxu0 %vm557_vm2, %v5490_v52 }
 0x158   : > { %4577 = vmatprep.mubr.msk.f32.mxu1 %vm557_vm2, %v5528_v15 }
 0x15a   : > { %4362 = vmatmul.mubr.msk.f32.gmra.mrb[52].mxu0 %vm557_vm2, %v5494_v54 }
 0x15b   : > { %4578 = vmatmul.mubr.msk.f32.gmra.mrb[20].mxu1 %vm557_vm2, %v5537_v21  ;;  %4364 = vmatprep.mubr.msk.f32.mxu0 %vm557_vm2, %v5508_v62 }
 0x15c   : > { %4580 = vmatprep.mubr.msk.f32.mxu1 %vm557_vm2, %v5546_v33 }
 0x15e   : > { %4365 = vmatmul.mubr.msk.f32.gmra.mrb[54].mxu0 %vm557_vm2, %v5512_v0 }
 0x15f   : > { %4581 = vmatmul.mubr.msk.f32.gmra.mrb[22].mxu1 %vm557_vm2, %v5555_v39  ;;  %4367 = vmatprep.mubr.msk.f32.mxu0 %vm557_vm2, %v5526_v14 }
 0x160   : > { %4583 = vmatprep.mubr.msk.f32.mxu1 %vm557_vm2, %v5564_v51 }
 0x162   : > { %4368 = vmatmul.mubr.msk.f32.gmra.mrb[56].mxu0 %vm557_vm2, %v5530_v20 }
 0x163   : > { %4584 = vmatmul.mubr.msk.f32.gmra.mrb[24].mxu1 %vm557_vm2, %v5573_v57  ;;  %4370 = vmatprep.mubr.msk.f32.mxu0 %vm557_vm2, %v5544_v32 }
 0x164   : > { %4586 = vmatprep.mubr.msk.f32.mxu1 %vm557_vm2, %v5581_v9 }
 0x166   : > { %4371 = vmatmul.mubr.msk.f32.gmra.mrb[58].mxu0 %vm557_vm2, %v5548_v38 }
 0x167   : > { %4587 = vmatmul.mubr.msk.f32.gmra.mrb[26].mxu1 %vm557_vm2, %v5589_v27  ;;  %4373 = vmatprep.mubr.msk.f32.mxu0 %vm557_vm2, %v5562_v50 }
 0x168   : > { %4589 = vmatprep.mubr.msk.f32.mxu1 %vm557_vm2, %v5597_v61  ;;  %v2444_v61 = vld [vmem:[#allocation2 + $0xa] sm:$0xff] }
 0x16a   : > { %4374 = vmatmul.mubr.msk.f32.gmra.mrb[60].mxu0 %vm557_vm2, %v5566_v56 }
 0x16b   : > { %4590 = vmatmul.mubr.msk.f32.gmra.mrb[28].mxu1 %vm557_vm2, %v5605_v8  ;;  %4376 = vmatprep.mubr.msk.f32.mxu0 %vm557_vm2, %v6358_v3  ;;  %v3798_v8 = vld [vmem:[%s6339_s2 + $0x88] sm:$0xf] }
 0x16c   : > { %4592 = vmatprep.mubr.msk.f32.mxu1 %vm557_vm2, %v1541_v60  ;;  %v3654_v60 = vld [vmem:[%s6339_s2 + $0x28] sm:$0xf] }
 0x16e   : > { %4377 = vmatmul.mubr.msk.f32.gmra.mrb[62].mxu0 %vm557_vm2, %v6359_v26 }
 0x16f   : > { %4593 = vmatmul.mubr.msk.f32.gmra.mrb[30].mxu1 %vm557_vm2, %v1542_v6  ;;  %4385 = vmatprep.mubr.msk.f32.mxu0 %vm557_vm2, %v5336_v2  ;;  %v3833_v2 = vld [vmem:[%s6339_s2 + $0xc8] sm:$0xff] }
 0x170   : > { %4601 = vmatprep.mubr.msk.f32.mxu1 %vm557_vm2, %v2443_v45  ;;  %v5794_v6 = vpack.c.bf16 %v3833_v2, %v3832_v5  ;;  %v5954_v45 = vld [vmem:[#allocation2 + $0x15a] sm:$0xff]  ;;  %v5965_v2 = vld [vmem:[#allocation2 + $0x172] sm:$0xff] }
 0x171   : > { %v1507_v5 = vld [vmem:[#allocation2 + $0x1] sm:$0xff] }
 0x172   : > { %4386 = vmatmul.mubr.msk.f32.vlgmr.msra.gmra.mrb[32].mxu0 %vm557_vm2, %v5340_v4  ;;  %v5788_v4 = vld [vmem:[#allocation2 + $0x22] sm:$0xff] }
 0x173   : > { %4602 = vmatmul.mubr.msk.f32.vlgmr.msra.gmra.mrb[0].mxu1 %vm557_vm2, %v2444_v61  ;;  %4388 = vmatprep.mubr.msk.f32.mxu0 %vm557_vm2, %v5362_v10  ;;  %v5800_v10 = vld [vmem:[#allocation2 + $0x32] sm:$0xff]  ;;  %v6361_v61 = vld [vmem:[#allocation9_spill] sm:$0xff] }
 0x174   : > { %4788 = vmatpush3.bf16.msra.mxu1 %v5636_v44  ;;  %4604 = vmatprep.mubr.msk.f32.mxu1 %vm557_vm2, %v5783_v58  ;;  %v5808_v44 = vld [vmem:[#allocation2 + $0x3a] sm:$0xff] }
 0x175   : > { %4653 = vmatprep.subr.msk.mxu1 %vm328_vm0, %v3798_v8  ;;  %4772 = vmatpush3.bf16.msra.mxu0 %v5654_v59  ;;  %v6360_v59 = vld [vmem:[#allocation8_spill] sm:$0xff] }
 0x176   : > { %4389 = vmatmul.mubr.msk.f32.gmra.mrb[34].mxu0 %vm557_vm2, %v5366_v12  ;;  %4437 = vmatprep.subr.msk.mxu0 %vm328_vm0, %v3654_v60  ;;  %v5816_v12 = vld [vmem:[#allocation2 + $0x4a] sm:$0xff] }
 0x177   : > { %4605 = vmatmul.mubr.msk.f32.gmra.mrb[2].mxu1 %vm557_vm2, %v5788_v4  ;;  %4391 = vmatprep.mubr.msk.f32.mxu0 %vm557_vm2, %v5382_v16  ;;  %v5822_v16 = vld [vmem:[#allocation2 + $0x52] sm:$0xff] }
 0x178   : > { %4607 = vmatprep.mubr.msk.f32.mxu1 %vm557_vm2, %v5800_v10  ;;  %4654 = vmatpush3.msk.msra.mxu1 %vm328_vm0, %v3798_v8  ;;  %v671_v8 = vld [vmem:[#allocation2 + $0x1a0] sm:$0xff] }
 0x179   : > { %4438 = vmatpush3.msk.msra.mxu0 %vm328_vm0, %v3654_v60  ;;  %4790 = vmatprep.subr.bf16.mxu1 %v5794_v6  ;;  %v1508_v60 = vld [vmem:[#allocation2 + $0x9] sm:$0xff] }
 0x17a   : > { %4392 = vmatmul.mubr.msk.f32.gmra.mrb[36].mxu0 %vm557_vm2, %v5386_v18  ;;  %v5828_v18 = vld [vmem:[#allocation2 + $0x62] sm:$0xff] }
 0x17b   : > { %4608 = vmatmul.mubr.msk.f32.gmra.mrb[4].mxu1 %vm557_vm2, %v5808_v44  ;;  %4394 = vmatprep.mubr.msk.f32.mxu0 %vm557_vm2, %v5400_v22  ;;  %v5834_v22 = vld [vmem:[#allocation2 + $0x6a] sm:$0xff] }
 0x17c   : > { %4610 = vmatprep.mubr.msk.f32.mxu1 %vm557_vm2, %v5816_v12 }
 0x17e   : > { %4395 = vmatmul.mubr.msk.f32.gmra.mrb[38].mxu0 %vm557_vm2, %v5404_v24  ;;  %v5840_v24 = vld [vmem:[#allocation2 + $0x7a] sm:$0xff] }
 0x17f   : > { %4611 = vmatmul.mubr.msk.f32.gmra.mrb[6].mxu1 %vm557_vm2, %v5822_v16  ;;  %4397 = vmatprep.mubr.msk.f32.mxu0 %vm557_vm2, %v5418_v28  ;;  %v5846_v28 = vld [vmem:[#allocation2 + $0x82] sm:$0xff] }
 0x180   : > { %4613 = vmatprep.mubr.msk.f32.mxu1 %vm557_vm2, %v5828_v18 }
 0x182   : > { %4398 = vmatmul.mubr.msk.f32.gmra.mrb[40].mxu0 %vm557_vm2, %v5422_v30  ;;  %v5852_v30 = vld [vmem:[#allocation2 + $0x92] sm:$0xff] }
 0x183   : > { %4614 = vmatmul.mubr.msk.f32.gmra.mrb[8].mxu1 %vm557_vm2, %v5834_v22  ;;  %4400 = vmatprep.mubr.msk.f32.mxu0 %vm557_vm2, %v5436_v34  ;;  %v5858_v34 = vld [vmem:[#allocation2 + $0x9a] sm:$0xff] }
 0x184   : > { %4616 = vmatprep.mubr.msk.f32.mxu1 %vm557_vm2, %v5840_v24 }
 0x186   : > { %4401 = vmatmul.mubr.msk.f32.gmra.mrb[42].mxu0 %vm557_vm2, %v5440_v36  ;;  %v5864_v36 = vld [vmem:[#allocation2 + $0xaa] sm:$0xff] }
 0x187   : > { %4617 = vmatmul.mubr.msk.f32.gmra.mrb[10].mxu1 %vm557_vm2, %v5846_v28  ;;  %4403 = vmatprep.mubr.msk.f32.mxu0 %vm557_vm2, %v5454_v40  ;;  %v5870_v40 = vld [vmem:[#allocation2 + $0xb2] sm:$0xff] }
 0x188   : > { %4619 = vmatprep.mubr.msk.f32.mxu1 %vm557_vm2, %v5852_v30 }
 0x18a   : > { %4404 = vmatmul.mubr.msk.f32.gmra.mrb[44].mxu0 %vm557_vm2, %v5458_v42  ;;  %v5876_v42 = vld [vmem:[#allocation2 + $0xc2] sm:$0xff] }
 0x18b   : > { %4620 = vmatmul.mubr.msk.f32.gmra.mrb[12].mxu1 %vm557_vm2, %v5858_v34  ;;  %4406 = vmatprep.mubr.msk.f32.mxu0 %vm557_vm2, %v5472_v46  ;;  %v5882_v46 = vld [vmem:[#allocation2 + $0xca] sm:$0xff] }
 0x18c   : > { %4622 = vmatprep.mubr.msk.f32.mxu1 %vm557_vm2, %v5864_v36 }
 0x18e   : > { %4407 = vmatmul.mubr.msk.f32.gmra.mrb[46].mxu0 %vm557_vm2, %v5476_v48  ;;  %v5888_v48 = vld [vmem:[#allocation2 + $0xda] sm:$0xff] }
 0x18f   : > { %4623 = vmatmul.mubr.msk.f32.gmra.mrb[14].mxu1 %vm557_vm2, %v5870_v40  ;;  %4409 = vmatprep.mubr.msk.f32.mxu0 %vm557_vm2, %v5490_v52  ;;  %v5894_v52 = vld [vmem:[#allocation2 + $0xe2] sm:$0xff] }
 0x190   : > { %4625 = vmatprep.mubr.msk.f32.mxu1 %vm557_vm2, %v5876_v42 }
 0x192   : > { %4410 = vmatmul.mubr.msk.f32.gmra.mrb[48].mxu0 %vm557_vm2, %v5494_v54  ;;  %v5900_v54 = vld [vmem:[#allocation2 + $0xf2] sm:$0xff] }
 0x193   : > { %4626 = vmatmul.mubr.msk.f32.gmra.mrb[16].mxu1 %vm557_vm2, %v5882_v46  ;;  %4412 = vmatprep.mubr.msk.f32.mxu0 %vm557_vm2, %v5508_v62  ;;  %v5906_v62 = vld [vmem:[#allocation2 + $0xfa] sm:$0xff] }
 0x194   : > { %4628 = vmatprep.mubr.msk.f32.mxu1 %vm557_vm2, %v5888_v48 }
 0x196   : > { %4413 = vmatmul.mubr.msk.f32.gmra.mrb[50].mxu0 %vm557_vm2, %v5512_v0  ;;  %v5912_v0 = vld [vmem:[#allocation2 + $0x10a] sm:$0xff] }
 0x197   : > { %4629 = vmatmul.mubr.msk.f32.gmra.mrb[18].mxu1 %vm557_vm2, %v5894_v52  ;;  %4415 = vmatprep.mubr.msk.f32.mxu0 %vm557_vm2, %v5526_v14  ;;  %v5918_v14 = vld [vmem:[#allocation2 + $0x112] sm:$0xff] }
 0x198   : > { %4631 = vmatprep.mubr.msk.f32.mxu1 %vm557_vm2, %v5900_v54 }
 0x19a   : > { %4416 = vmatmul.mubr.msk.f32.gmra.mrb[52].mxu0 %vm557_vm2, %v5530_v20  ;;  %v5924_v20 = vld [vmem:[#allocation2 + $0x122] sm:$0xff] }
 0x19b   : > { %4632 = vmatmul.mubr.msk.f32.gmra.mrb[20].mxu1 %vm557_vm2, %v5906_v62  ;;  %4418 = vmatprep.mubr.msk.f32.mxu0 %vm557_vm2, %v5544_v32  ;;  %v5930_v32 = vld [vmem:[#allocation2 + $0x12a] sm:$0xff] }
 0x19c   : > { %4634 = vmatprep.mubr.msk.f32.mxu1 %vm557_vm2, %v5912_v0 }
 0x19e   : > { %4419 = vmatmul.mubr.msk.f32.gmra.mrb[54].mxu0 %vm557_vm2, %v5548_v38  ;;  %v5936_v38 = vld [vmem:[#allocation2 + $0x13a] sm:$0xff] }
 0x19f   : > { %4635 = vmatmul.mubr.msk.f32.gmra.mrb[22].mxu1 %vm557_vm2, %v5918_v14  ;;  %4421 = vmatprep.mubr.msk.f32.mxu0 %vm557_vm2, %v5562_v50  ;;  %v5942_v50 = vld [vmem:[#allocation2 + $0x142] sm:$0xff] }
 0x1a0   : > { %4637 = vmatprep.mubr.msk.f32.mxu1 %vm557_vm2, %v5924_v20 }
 0x1a2   : > { %4422 = vmatmul.mubr.msk.f32.gmra.mrb[56].mxu0 %vm557_vm2, %v5566_v56  ;;  %v5948_v56 = vld [vmem:[#allocation2 + $0x152] sm:$0xff] }
 0x1a3   : > { %4638 = vmatmul.mubr.msk.f32.gmra.mrb[24].mxu1 %vm557_vm2, %v5930_v32  ;;  %4424 = vmatprep.mubr.msk.f32.mxu0 %vm557_vm2, %v6358_v3  ;;  %v670_v3 = vld [vmem:[#allocation2 + $0x198] sm:$0xff] }
 0x1a4   : > { %4640 = vmatprep.mubr.msk.f32.mxu1 %vm557_vm2, %v5936_v38 }
 0x1a6   : > { %4425 = vmatmul.mubr.msk.f32.gmra.mrb[58].mxu0 %vm557_vm2, %v6359_v26  ;;  %v5960_v26 = vld [vmem:[#allocation2 + $0x16a] sm:$0xff] }
 0x1a7   : > { %4641 = vmatmul.mubr.msk.f32.gmra.mrb[26].mxu1 %vm557_vm2, %v5942_v50  ;;  %4427 = vmatprep.mubr.msk.f32.mxu0 %vm557_vm2, %v6360_v59  ;;  %v3834_v59 = vld [vmem:[%s6339_s2 + $0xd0] sm:$0xf] }
 0x1a8   : > { %4643 = vmatprep.mubr.msk.f32.mxu1 %vm557_vm2, %v5948_v56 }
 0x1aa   : > { %4428 = vmatmul.mubr.msk.f32.gmra.mrb[60].mxu0 %vm557_vm2, %v6361_v61  ;;  %v6364_v61 = vld [vmem:[#allocation5_spill] sm:$0xff] }
 0x1ab   : > { %4644 = vmatmul.mubr.msk.f32.gmra.mrb[28].mxu1 %vm557_vm2, %v5954_v45  ;;  %4430 = vmatprep.mubr.msk.f32.mxu0 %vm557_vm2, %v670_v3  ;;  %v6362_v3 = vld [vmem:[#allocation3_spill] sm:$0xff] }
 0x1ac   : > { %4646 = vmatprep.mubr.msk.f32.mxu1 %vm557_vm2, %v5960_v26 }
 0x1ae   : > { %4431 = vmatmul.mubr.msk.f32.gmra.mrb[62].mxu0 %vm557_vm2, %v671_v8 }
 0x1af   : > { %4647 = vmatmul.mubr.msk.f32.gmra.mrb[30].mxu1 %vm557_vm2, %v5965_v2  ;;  %4439 = vmatprep.mubr.msk.f32.mxu0 %vm557_vm2, %v1507_v5 }
 0x1b0   : > { %4655 = vmatprep.mubr.msk.f32.mxu1 %vm557_vm2, %v5783_v58  ;;  %v6363_v58 = vld [vmem:[#allocation4_spill] sm:$0xff] }
 0x1b2   : > { %4440 = vmatmul.mubr.msk.f32.vlgmr.msra.gmra.mrb[32].mxu0 %vm557_vm2, %v1508_v60 }
 0x1b3   : > { %4656 = vmatmul.mubr.msk.f32.vlgmr.msra.gmra.mrb[0].mxu1 %vm557_vm2, %v5788_v4  ;;  %4442 = vmatprep.mubr.msk.f32.mxu0 %vm557_vm2, %v6362_v3 }
 0x1b4   : > { %4792 = vmatpush3.bf16.msra.mxu1 %v5794_v6  ;;  %4658 = vmatprep.mubr.msk.f32.mxu1 %vm557_vm2, %v5800_v10 }
 0x1b5   : > { %4707 = vmatprep.subr.msk.mxu1 %vm328_vm0, %v3834_v59 }
 0x1b6   : > { %4443 = vmatmul.mubr.msk.f32.gmra.mrb[34].mxu0 %vm557_vm2, %v6363_v58 }
 0x1b7   : > { %4659 = vmatmul.mubr.msk.f32.gmra.mrb[2].mxu1 %vm557_vm2, %v5808_v44  ;;  %4445 = vmatprep.mubr.msk.f32.mxu0 %vm557_vm2, %v6364_v61 }
 0x1b8   : > { %4661 = vmatprep.mubr.msk.f32.mxu1 %vm557_vm2, %v5816_v12  ;;  %4708 = vmatpush3.msk.msra.mxu1 %vm328_vm0, %v3834_v59 }
 0x1ba   : > { %4446 = vmatmul.mubr.msk.f32.gmra.mrb[36].mxu0 %vm557_vm2, %v5353_v7  ;;  %v2475_v7 = vld [vmem:[#allocation2 + $0x182] sm:$0xff] }
 0x1bb   : > { %4662 = vmatmul.mubr.msk.f32.gmra.mrb[4].mxu1 %vm557_vm2, %v5822_v16  ;;  %4448 = vmatprep.mubr.msk.f32.mxu0 %vm557_vm2, %v5364_v11  ;;  %v2476_v11 = vld [vmem:[#allocation2 + $0x18a] sm:$0xff] }
 0x1bc   : > { %4664 = vmatprep.mubr.msk.f32.mxu1 %vm557_vm2, %v5828_v18 }
 0x1be   : > { %4449 = vmatmul.mubr.msk.f32.gmra.mrb[38].mxu0 %vm557_vm2, %v5375_v13  ;;  %v2477_v13 = vld [vmem:[#allocation2 + $0x19a] sm:$0xff] }
 0x1bf   : > { %4665 = vmatmul.mubr.msk.f32.gmra.mrb[6].mxu1 %vm557_vm2, %v5834_v22  ;;  %4451 = vmatprep.mubr.msk.f32.mxu0 %vm557_vm2, %v5384_v17  ;;  %v2478_v17 = vld [vmem:[#allocation2 + $0x1a2] sm:$0xff] }
 0x1c0   : > { %4667 = vmatprep.mubr.msk.f32.mxu1 %vm557_vm2, %v5840_v24 }
 0x1c2   : > { %4452 = vmatmul.mubr.msk.f32.gmra.mrb[40].mxu0 %vm557_vm2, %v5393_v19 }
 0x1c3   : > { %4668 = vmatmul.mubr.msk.f32.gmra.mrb[8].mxu1 %vm557_vm2, %v5846_v28  ;;  %4454 = vmatprep.mubr.msk.f32.mxu0 %vm557_vm2, %v5402_v23 }
 0x1c4   : > { %4670 = vmatprep.mubr.msk.f32.mxu1 %vm557_vm2, %v5852_v30 }
 0x1c6   : > { %4455 = vmatmul.mubr.msk.f32.gmra.mrb[42].mxu0 %vm557_vm2, %v5411_v25 }
 0x1c7   : > { %4671 = vmatmul.mubr.msk.f32.gmra.mrb[10].mxu1 %vm557_vm2, %v5858_v34  ;;  %4457 = vmatprep.mubr.msk.f32.mxu0 %vm557_vm2, %v5420_v29 }
 0x1c8   : > { %4673 = vmatprep.mubr.msk.f32.mxu1 %vm557_vm2, %v5864_v36 }
 0x1ca   : > { %4458 = vmatmul.mubr.msk.f32.gmra.mrb[44].mxu0 %vm557_vm2, %v5429_v31 }
 0x1cb   : > { %4674 = vmatmul.mubr.msk.f32.gmra.mrb[12].mxu1 %vm557_vm2, %v5870_v40  ;;  %4460 = vmatprep.mubr.msk.f32.mxu0 %vm557_vm2, %v5438_v35 }
 0x1cc   : > { %4676 = vmatprep.mubr.msk.f32.mxu1 %vm557_vm2, %v5876_v42 }
 0x1ce   : > { %4461 = vmatmul.mubr.msk.f32.gmra.mrb[46].mxu0 %vm557_vm2, %v5447_v37 }
 0x1cf   : > { %4677 = vmatmul.mubr.msk.f32.gmra.mrb[14].mxu1 %vm557_vm2, %v5882_v46  ;;  %4463 = vmatprep.mubr.msk.f32.mxu0 %vm557_vm2, %v5456_v41 }
 0x1d0   : > { %4679 = vmatprep.mubr.msk.f32.mxu1 %vm557_vm2, %v5888_v48 }
 0x1d2   : > { %4464 = vmatmul.mubr.msk.f32.gmra.mrb[48].mxu0 %vm557_vm2, %v5465_v43 }
 0x1d3   : > { %4680 = vmatmul.mubr.msk.f32.gmra.mrb[16].mxu1 %vm557_vm2, %v5894_v52  ;;  %4466 = vmatprep.mubr.msk.f32.mxu0 %vm557_vm2, %v5474_v47 }
 0x1d4   : > { %4682 = vmatprep.mubr.msk.f32.mxu1 %vm557_vm2, %v5900_v54 }
 0x1d6   : > { %4467 = vmatmul.mubr.msk.f32.gmra.mrb[50].mxu0 %vm557_vm2, %v5483_v49 }
 0x1d7   : > { %4683 = vmatmul.mubr.msk.f32.gmra.mrb[18].mxu1 %vm557_vm2, %v5906_v62  ;;  %4469 = vmatprep.mubr.msk.f32.mxu0 %vm557_vm2, %v5492_v53 }
 0x1d8   : > { %4685 = vmatprep.mubr.msk.f32.mxu1 %vm557_vm2, %v5912_v0 }
 0x1da   : > { %4470 = vmatmul.mubr.msk.f32.gmra.mrb[52].mxu0 %vm557_vm2, %v5501_v55 }
 0x1db   : > { %4686 = vmatmul.mubr.msk.f32.gmra.mrb[20].mxu1 %vm557_vm2, %v5918_v14  ;;  %4472 = vmatprep.mubr.msk.f32.mxu0 %vm557_vm2, %v5510_v63 }
 0x1dc   : > { %4688 = vmatprep.mubr.msk.f32.mxu1 %vm557_vm2, %v5924_v20 }
 0x1de   : > { %4473 = vmatmul.mubr.msk.f32.gmra.mrb[54].mxu0 %vm557_vm2, %v5519_v1 }
 0x1df   : > { %4689 = vmatmul.mubr.msk.f32.gmra.mrb[22].mxu1 %vm557_vm2, %v5930_v32  ;;  %4475 = vmatprep.mubr.msk.f32.mxu0 %vm557_vm2, %v5528_v15 }
 0x1e0   : > { %4691 = vmatprep.mubr.msk.f32.mxu1 %vm557_vm2, %v5936_v38 }
 0x1e2   : > { %4476 = vmatmul.mubr.msk.f32.gmra.mrb[56].mxu0 %vm557_vm2, %v5537_v21 }
 0x1e3   : > { %4692 = vmatmul.mubr.msk.f32.gmra.mrb[24].mxu1 %vm557_vm2, %v5942_v50  ;;  %4478 = vmatprep.mubr.msk.f32.mxu0 %vm557_vm2, %v5546_v33 }
 0x1e4   : > { %4694 = vmatprep.mubr.msk.f32.mxu1 %vm557_vm2, %v5948_v56 }
 0x1e6   : > { %4479 = vmatmul.mubr.msk.f32.gmra.mrb[58].mxu0 %vm557_vm2, %v5555_v39 }
 0x1e7   : > { %4695 = vmatmul.mubr.msk.f32.gmra.mrb[26].mxu1 %vm557_vm2, %v5954_v45  ;;  %4481 = vmatprep.mubr.msk.f32.mxu0 %vm557_vm2, %v5564_v51 }
 0x1e8   : > { %4697 = vmatprep.mubr.msk.f32.mxu1 %vm557_vm2, %v5960_v26 }
 0x1ea   : > { %4482 = vmatmul.mubr.msk.f32.gmra.mrb[60].mxu0 %vm557_vm2, %v5573_v57 }
 0x1eb   : > { %4698 = vmatmul.mubr.msk.f32.gmra.mrb[28].mxu1 %vm557_vm2, %v5965_v2  ;;  %4484 = vmatprep.mubr.msk.f32.mxu0 %vm557_vm2, %v5581_v9 }
 0x1ec   : > { %4700 = vmatprep.mubr.msk.f32.mxu1 %vm557_vm2, %v2475_v7 }
 0x1ee   : > { %4485 = vmatmul.mubr.msk.f32.gmra.mrb[62].mxu0 %vm557_vm2, %v5589_v27 }
 0x1ef   : > { %4701 = vmatmul.mubr.msk.f32.gmra.mrb[30].mxu1 %vm557_vm2, %v2476_v11 }
 0x1f0   : > { %4709 = vmatprep.mubr.msk.f32.mxu1 %vm557_vm2, %v5800_v10 }
 0x1f3   : > { %4710 = vmatmul.mubr.msk.f32.vlgmr.msra.gmra.mrb[0].mxu1 %vm557_vm2, %v5808_v44 }
 0x1f4   : > { %4712 = vmatprep.mubr.msk.f32.mxu1 %vm557_vm2, %v5816_v12 }
 0x1f7   : > { %4713 = vmatmul.mubr.msk.f32.gmra.mrb[2].mxu1 %vm557_vm2, %v5822_v16 }
 0x1f8   : > { %4715 = vmatprep.mubr.msk.f32.mxu1 %vm557_vm2, %v5828_v18 }
 0x1fb   : > { %4716 = vmatmul.mubr.msk.f32.gmra.mrb[4].mxu1 %vm557_vm2, %v5834_v22 }
 0x1fc   : > { %4718 = vmatprep.mubr.msk.f32.mxu1 %vm557_vm2, %v5840_v24 }
 0x1ff   : > { %4719 = vmatmul.mubr.msk.f32.gmra.mrb[6].mxu1 %vm557_vm2, %v5846_v28 }
 0x200   : > { %4721 = vmatprep.mubr.msk.f32.mxu1 %vm557_vm2, %v5852_v30  ;;  %v6207_v30 = vld [vmem:[%s6340_s3] ss:$0 sm:$0xff] }
 0x203   : > { %4722 = vmatmul.mubr.msk.f32.gmra.mrb[8].mxu1 %vm557_vm2, %v5858_v34 }
 0x204   : > { %4724 = vmatprep.mubr.msk.f32.mxu1 %vm557_vm2, %v5864_v36 }
 0x207   : > { %4725 = vmatmul.mubr.msk.f32.gmra.mrb[10].mxu1 %vm557_vm2, %v5870_v40 }
 0x208   : > { %4727 = vmatprep.mubr.msk.f32.mxu1 %vm557_vm2, %v5876_v42 }
 0x20b   : > { %4728 = vmatmul.mubr.msk.f32.gmra.mrb[12].mxu1 %vm557_vm2, %v5882_v46 }
 0x20c   : > { %4730 = vmatprep.mubr.msk.f32.mxu1 %vm557_vm2, %v5888_v48 }
 0x20f   : > { %4731 = vmatmul.mubr.msk.f32.gmra.mrb[14].mxu1 %vm557_vm2, %v5894_v52 }
 0x210   : > { %4733 = vmatprep.mubr.msk.f32.mxu1 %vm557_vm2, %v5900_v54 }
 0x213   : > { %4734 = vmatmul.mubr.msk.f32.gmra.mrb[16].mxu1 %vm557_vm2, %v5906_v62 }
 0x214   : > { %4736 = vmatprep.mubr.msk.f32.mxu1 %vm557_vm2, %v5912_v0 }
 0x217   : > { %4737 = vmatmul.mubr.msk.f32.gmra.mrb[18].mxu1 %vm557_vm2, %v5918_v14 }
 0x218   : > { %4739 = vmatprep.mubr.msk.f32.mxu1 %vm557_vm2, %v5924_v20 }
 0x21b   : > { %4740 = vmatmul.mubr.msk.f32.gmra.mrb[20].mxu1 %vm557_vm2, %v5930_v32 }
 0x21c   : > { %4742 = vmatprep.mubr.msk.f32.mxu1 %vm557_vm2, %v5936_v38 }
 0x21f   : > { %4743 = vmatmul.mubr.msk.f32.gmra.mrb[22].mxu1 %vm557_vm2, %v5942_v50 }
 0x220   : > { %4745 = vmatprep.mubr.msk.f32.mxu1 %vm557_vm2, %v5948_v56 }
 0x223   : > { %4746 = vmatmul.mubr.msk.f32.gmra.mrb[24].mxu1 %vm557_vm2, %v5954_v45 }
 0x224   : > { %4748 = vmatprep.mubr.msk.f32.mxu1 %vm557_vm2, %v5960_v26 }
 0x227   : > { %4749 = vmatmul.mubr.msk.f32.gmra.mrb[26].mxu1 %vm557_vm2, %v5965_v2 }
 0x228   : > { %4751 = vmatprep.mubr.msk.f32.mxu1 %vm557_vm2, %v2475_v7 }
 0x22b   : > { %4752 = vmatmul.mubr.msk.f32.gmra.mrb[28].mxu1 %vm557_vm2, %v2476_v11 }
 0x22c   : > { %4754 = vmatprep.mubr.msk.f32.mxu1 %vm557_vm2, %v2477_v13 }
 0x22f   : > { %4755 = vmatmul.mubr.msk.f32.gmra.mrb[30].mxu1 %vm557_vm2, %v2478_v17 }
 0x285   : > { %v4441_v19 = vpop.f32.mrb[32].mxu0 }
 0x286   : > { %v1712_v23 = vpop.f32.mrb[33].mxu0 }
 0x289   : > { %v4444_v25 = vpop.f32.mrb[34].mxu0 }
 0x28a   : > { %v1722_v29 = vpop.f32.mrb[35].mxu0 }
 0x28d   : > { %v4447_v31 = vpop.f32.mrb[36].mxu0 }
 0x28e   : > { %v1732_v35 = vpop.f32.mrb[37].mxu0 }
 0x291   : > { %v4450_v37 = vpop.f32.mrb[38].mxu0 }
 0x292   : > { %v1742_v41 = vpop.f32.mrb[39].mxu0 }
 0x295   : > { %v4453_v43 = vpop.f32.mrb[40].mxu0 }
 0x296   : > { %v1752_v47 = vpop.f32.mrb[41].mxu0 }
 0x299   : > { %v6160_v49 = vpop.f32.mrb[42].mxu0 }
 0x29a   : > { %v6162_v53 = vpop.f32.mrb[43].mxu0 }
 0x29d   : > { %v6164_v55 = vpop.f32.mrb[44].mxu0 }
 0x29e   : > { %v6166_v63 = vpop.f32.mrb[45].mxu0 }
 0x2a1   : > { %v6168_v1 = vpop.f32.mrb[46].mxu0 }
 0x2a2   : > { %v6170_v15 = vpop.f32.mrb[47].mxu0 }
 0x2a5   : > { %v6172_v21 = vpop.f32.mrb[48].mxu0 }
 0x2a6   : > { %v6174_v33 = vpop.f32.mrb[49].mxu0 }
 0x2a9   : > { %v6176_v39 = vpop.f32.mrb[50].mxu0 }
 0x2aa   : > { %v6178_v51 = vpop.f32.mrb[51].mxu0 }
 0x2ad   : > { %v6180_v57 = vpop.f32.mrb[52].mxu0 }
 0x2ae   : > { %v6182_v9 = vpop.f32.mrb[53].mxu0 }
 0x2b1   : > { %v6184_v27 = vpop.f32.mrb[54].mxu0 }
 0x2b2   : > { %v6186_v4 = vpop.f32.mrb[55].mxu0 }
 0x2b5   : > { %v6188_v6 = vpop.f32.mrb[56].mxu0 }
 0x2b6   : > { %v6190_v10 = vpop.f32.mrb[57].mxu0 }
 0x2b9   : > { %v6192_v44 = vpop.f32.mrb[58].mxu0 }
 0x2ba   : > { %v6194_v12 = vpop.f32.mrb[59].mxu0 }
 0x2bd   : > { %v6196_v16 = vpop.f32.mrb[60].mxu0 }
 0x2be   : > { %v6198_v18 = vpop.f32.mrb[61].mxu0 }
 0x2c1   : > { %v6200_v22 = vpop.f32.mrb[62].mxu0 }
 0x2c2   : > { %v6202_v24 = vpop.f32.mrb[63].mxu0 }
 0x2c6   : > { %v4711_v28 = vpop.f32.mrb[0].mxu1 }
 0x2c7   : > { %v4793_v34 = vadd.f32 %v4711_v28, %v4441_v19  ;;  %v3188_v36 = vpop.f32.mrb[1].mxu1 }
 0x2c8   : > { %v4794_v40 = vadd.f32 %v3188_v36, %v1712_v23 }
 0x2c9   : > { %v3387_v42 = vadd.f32 %v4793_v34, %v6207_v30 }
 0x2ca   : > { %v3386_v46 = vadd.f32 %v4794_v40, %v6207_v30  ;;  %v4714_v48 = vpop.f32.mrb[2].mxu1 }
 0x2cb   : > { %3419 = vst.msk [vmem:[%s6214_s9 + $0x8] sm:$0xff] %vm231_vm1, %v3387_v42  ;;  %v4795_v52 = vadd.f32 %v4714_v48, %v4444_v25  ;;  %v3198_v54 = vpop.f32.mrb[3].mxu1 }
 0x2cc   : > { %3418 = vst.msk [vmem:[%s6214_s9] sm:$0xff] %vm231_vm1, %v3386_v46  ;;  %v4796_v62 = vadd.f32 %v3198_v54, %v1722_v29 }
 0x2cd   : > { %v3389_v0 = vadd.f32 %v4795_v52, %v6207_v30 }
 0x2ce   : > { %v3388_v14 = vadd.f32 %v4796_v62, %v6207_v30  ;;  %v4717_v20 = vpop.f32.mrb[4].mxu1 }
 0x2cf   : > { %3421 = vst.msk [vmem:[%s6214_s9 + $0x18] sm:$0xff] %vm231_vm1, %v3389_v0  ;;  %v4797_v32 = vadd.f32 %v4717_v20, %v4447_v31  ;;  %v3208_v38 = vpop.f32.mrb[5].mxu1 }
 0x2d0   : > { %3420 = vst.msk [vmem:[%s6214_s9 + $0x10] sm:$0xff] %vm231_vm1, %v3388_v14  ;;  %v4798_v50 = vadd.f32 %v3208_v38, %v1732_v35 }
 0x2d1   : > { %v3391_v56 = vadd.f32 %v4797_v32, %v6207_v30 }
 0x2d2   : > { %v3390_v45 = vadd.f32 %v4798_v50, %v6207_v30  ;;  %v4720_v26 = vpop.f32.mrb[6].mxu1 }
 0x2d3   : > { %3423 = vst.msk [vmem:[%s6214_s9 + $0x28] sm:$0xff] %vm231_vm1, %v3391_v56  ;;  %v4799_v8 = vadd.f32 %v4720_v26, %v4450_v37  ;;  %v3218_v5 = vpop.f32.mrb[7].mxu1 }
 0x2d4   : > { %3422 = vst.msk [vmem:[%s6214_s9 + $0x20] sm:$0xff] %vm231_vm1, %v3390_v45  ;;  %v4800_v2 = vadd.f32 %v3218_v5, %v1742_v41 }
 0x2d5   : > { %v3393_v60 = vadd.f32 %v4799_v8, %v6207_v30 }
 0x2d6   : > { %v3392_v59 = vadd.f32 %v4800_v2, %v6207_v30  ;;  %v4723_v3 = vpop.f32.mrb[8].mxu1 }
 0x2d7   : > { %3425 = vst.msk [vmem:[%s6214_s9 + $0x38] sm:$0xff] %vm231_vm1, %v3393_v60  ;;  %v4801_v58 = vadd.f32 %v4723_v3, %v4453_v43  ;;  %v3228_v61 = vpop.f32.mrb[9].mxu1 }
 0x2d8   : > { %3424 = vst.msk [vmem:[%s6214_s9 + $0x30] sm:$0xff] %vm231_vm1, %v3392_v59  ;;  %v4802_v7 = vadd.f32 %v3228_v61, %v1752_v47 }
 0x2d9   : > { %v3395_v11 = vadd.f32 %v4801_v58, %v6207_v30 }
 0x2da   : > { %v3394_v13 = vadd.f32 %v4802_v7, %v6207_v30  ;;  %v4726_v17 = vpop.f32.mrb[10].mxu1 }
 0x2db   : > { %3427 = vst.msk [vmem:[%s6214_s9 + $0x48] sm:$0xff] %vm231_vm1, %v3395_v11  ;;  %v4803_v19 = vadd.f32 %v4726_v17, %v6160_v49  ;;  %v3238_v23 = vpop.f32.mrb[11].mxu1 }
 0x2dc   : > { %3426 = vst.msk [vmem:[%s6214_s9 + $0x40] sm:$0xff] %vm231_vm1, %v3394_v13  ;;  %v4804_v25 = vadd.f32 %v3238_v23, %v6162_v53 }
 0x2dd   : > { %v3397_v29 = vadd.f32 %v4803_v19, %v6207_v30 }
 0x2de   : > { %v3396_v31 = vadd.f32 %v4804_v25, %v6207_v30  ;;  %v4729_v35 = vpop.f32.mrb[12].mxu1 }
 0x2df   : > { %3429 = vst.msk [vmem:[%s6214_s9 + $0x58] sm:$0xff] %vm231_vm1, %v3397_v29  ;;  %v4805_v37 = vadd.f32 %v4729_v35, %v6164_v55  ;;  %v3248_v41 = vpop.f32.mrb[13].mxu1 }
 0x2e0   : > { %3428 = vst.msk [vmem:[%s6214_s9 + $0x50] sm:$0xff] %vm231_vm1, %v3396_v31  ;;  %v4806_v43 = vadd.f32 %v3248_v41, %v6166_v63 }
 0x2e1   : > { %v3399_v47 = vadd.f32 %v4805_v37, %v6207_v30 }
 0x2e2   : > { %v3398_v49 = vadd.f32 %v4806_v43, %v6207_v30  ;;  %v4732_v53 = vpop.f32.mrb[14].mxu1 }
 0x2e3   : > { %3431 = vst.msk [vmem:[%s6214_s9 + $0x68] sm:$0xff] %vm231_vm1, %v3399_v47  ;;  %v4807_v28 = vadd.f32 %v4732_v53, %v6168_v1  ;;  %v3258_v34 = vpop.f32.mrb[15].mxu1 }
 0x2e4   : > { %3430 = vst.msk [vmem:[%s6214_s9 + $0x60] sm:$0xff] %vm231_vm1, %v3398_v49  ;;  %v4808_v55 = vadd.f32 %v3258_v34, %v6170_v15 }
 0x2e5   : > { %v3401_v36 = vadd.f32 %v4807_v28, %v6207_v30 }
 0x2e6   : > { %v3400_v63 = vadd.f32 %v4808_v55, %v6207_v30  ;;  %v4735_v40 = vpop.f32.mrb[16].mxu1 }
 0x2e7   : > { %3433 = vst.msk [vmem:[%s6214_s9 + $0x78] sm:$0xff] %vm231_vm1, %v3401_v36  ;;  %v4809_v42 = vadd.f32 %v4735_v40, %v6172_v21  ;;  %v3268_v46 = vpop.f32.mrb[17].mxu1 }
 0x2e8   : > { %3432 = vst.msk [vmem:[%s6214_s9 + $0x70] sm:$0xff] %vm231_vm1, %v3400_v63  ;;  %v4810_v1 = vadd.f32 %v3268_v46, %v6174_v33 }
 0x2e9   : > { %v3403_v48 = vadd.f32 %v4809_v42, %v6207_v30 }
 0x2ea   : > { %v3402_v15 = vadd.f32 %v4810_v1, %v6207_v30  ;;  %v4738_v52 = vpop.f32.mrb[18].mxu1 }
 0x2eb   : > { %3435 = vst.msk [vmem:[%s6214_s9 + $0x88] sm:$0xff] %vm231_vm1, %v3403_v48  ;;  %v4811_v54 = vadd.f32 %v4738_v52, %v6176_v39  ;;  %v3278_v62 = vpop.f32.mrb[19].mxu1 }
 0x2ec   : > { %3434 = vst.msk [vmem:[%s6214_s9 + $0x80] sm:$0xff] %vm231_vm1, %v3402_v15  ;;  %v4812_v21 = vadd.f32 %v3278_v62, %v6178_v51 }
 0x2ed   : > { %v3405_v0 = vadd.f32 %v4811_v54, %v6207_v30 }
 0x2ee   : > { %v3404_v33 = vadd.f32 %v4812_v21, %v6207_v30  ;;  %v4741_v14 = vpop.f32.mrb[20].mxu1 }
 0x2ef   : > { %3437 = vst.msk [vmem:[%s6214_s9 + $0x98] sm:$0xff] %vm231_vm1, %v3405_v0  ;;  %v4813_v20 = vadd.f32 %v4741_v14, %v6180_v57  ;;  %v3288_v32 = vpop.f32.mrb[21].mxu1 }
 0x2f0   : > { %3436 = vst.msk [vmem:[%s6214_s9 + $0x90] sm:$0xff] %vm231_vm1, %v3404_v33  ;;  %v4814_v39 = vadd.f32 %v3288_v32, %v6182_v9 }
 0x2f1   : > { %v3407_v38 = vadd.f32 %v4813_v20, %v6207_v30 }
 0x2f2   : > { %v3406_v51 = vadd.f32 %v4814_v39, %v6207_v30  ;;  %v4744_v50 = vpop.f32.mrb[22].mxu1 }
 0x2f3   : > { %3439 = vst.msk [vmem:[%s6214_s9 + $0xa8] sm:$0xff] %vm231_vm1, %v3407_v38  ;;  %v4815_v56 = vadd.f32 %v4744_v50, %v6184_v27  ;;  %v3298_v45 = vpop.f32.mrb[23].mxu1 }
 0x2f4   : > { %3438 = vst.msk [vmem:[%s6214_s9 + $0xa0] sm:$0xff] %vm231_vm1, %v3406_v51  ;;  %v4816_v57 = vadd.f32 %v3298_v45, %v6186_v4 }
 0x2f5   : > { %v3409_v26 = vadd.f32 %v4815_v56, %v6207_v30 }
 0x2f6   : > { %v3408_v9 = vadd.f32 %v4816_v57, %v6207_v30  ;;  %v4747_v8 = vpop.f32.mrb[24].mxu1 }
 0x2f7   : > { %3441 = vst.msk [vmem:[%s6214_s9 + $0xb8] sm:$0xff] %vm231_vm1, %v3409_v26  ;;  %v4817_v5 = vadd.f32 %v4747_v8, %v6188_v6  ;;  %v3308_v2 = vpop.f32.mrb[25].mxu1 }
 0x2f8   : > { %3440 = vst.msk [vmem:[%s6214_s9 + $0xb0] sm:$0xff] %vm231_vm1, %v3408_v9  ;;  %v4818_v27 = vadd.f32 %v3308_v2, %v6190_v10 }
 0x2f9   : > { %v3411_v60 = vadd.f32 %v4817_v5, %v6207_v30 }
 0x2fa   : > { %v3410_v4 = vadd.f32 %v4818_v27, %v6207_v30  ;;  %v4750_v59 = vpop.f32.mrb[26].mxu1 }
 0x2fb   : > { %3443 = vst.msk [vmem:[%s6214_s9 + $0xc8] sm:$0xff] %vm231_vm1, %v3411_v60  ;;  %v4819_v3 = vadd.f32 %v4750_v59, %v6192_v44  ;;  %v3318_v58 = vpop.f32.mrb[27].mxu1 }
 0x2fc   : > { %3442 = vst.msk [vmem:[%s6214_s9 + $0xc0] sm:$0xff] %vm231_vm1, %v3410_v4  ;;  %v4820_v6 = vadd.f32 %v3318_v58, %v6194_v12 }
 0x2fd   : > { %v3413_v61 = vadd.f32 %v4819_v3, %v6207_v30 }
 0x2fe   : > { %v3412_v10 = vadd.f32 %v4820_v6, %v6207_v30  ;;  %v4753_v7 = vpop.f32.mrb[28].mxu1 }
 0x2ff   : > { %3445 = vst.msk [vmem:[%s6214_s9 + $0xd8] sm:$0xff] %vm231_vm1, %v3413_v61  ;;  %v4821_v11 = vadd.f32 %v4753_v7, %v6196_v16  ;;  %v3328_v13 = vpop.f32.mrb[29].mxu1 }
 0x300   : > { %3444 = vst.msk [vmem:[%s6214_s9 + $0xd0] sm:$0xff] %vm231_vm1, %v3412_v10  ;;  %v4822_v44 = vadd.f32 %v3328_v13, %v6198_v18 }
 0x301   : > { %v3415_v17 = vadd.f32 %v4821_v11, %v6207_v30 }
 0x302   : > { %v3414_v12 = vadd.f32 %v4822_v44, %v6207_v30  ;;  %v4756_v19 = vpop.f32.mrb[30].mxu1 }
 0x303   : > { %3447 = vst.msk [vmem:[%s6214_s9 + $0xe8] sm:$0xff] %vm231_vm1, %v3415_v17  ;;  %v4823_v23 = vadd.f32 %v4756_v19, %v6200_v22  ;;  %v3338_v25 = vpop.f32.mrb[31].mxu1 }
 0x304   : > { %3446 = vst.msk [vmem:[%s6214_s9 + $0xe0] sm:$0xff] %vm231_vm1, %v3414_v12  ;;  %v4824_v29 = vadd.f32 %v3338_v25, %v6202_v24 }
 0x305   : > { %v3417_v16 = vadd.f32 %v4823_v23, %v6207_v30 }
 0x306   : > { %v3416_v31 = vadd.f32 %v4824_v29, %v6207_v30 }
 0x307   : > { %3449 = vst.msk [vmem:[%s6214_s9 + $0xf8] sm:$0xff] %vm231_vm1, %v3417_v16 }
 0x308   : > { %3448 = vst.msk [vmem:[%s6214_s9 + $0xf0] sm:$0xff] %vm231_vm1, %v3416_v31 }
 0x309 PF: > { %s14_s15 = sadd.s32 1, %s5064_s15  }
 0x30a   : > { %p11_p4 = scmp.ge.s32.totalorder %s14_s15, 4  }
 0x30c   :  { %13 = sbr.rel (!%p11_p4) target bundleno = 1 (0x1), region = 76 }

</bundles_post_ra>
